<compile_context>
chip_gen: v7x
topology: tpu7x:2x2x1
jax: 0.10.0
libtpu: 0.0.40
codegen_flags: <defaults>
</compile_context>

<pallas_src>
import jax
import jax.numpy as jnp
from jax import lax
from jax.experimental import pallas as pl
from jax.experimental.pallas import tpu as pltpu

# ---------------- small synthetic sizes consistent with the module --------------
B = 2            # batch
T = 8            # sequence length
E = 32           # embedding_dim
H = 32           # hidden_dim (must equal E, see note above)
NUM_TAGS = 2     # self.NUM_TAGS

B_PAD = 8        # batch padded to a full sublane group
TAG_PAD = 128    # tag / tags-out lane dim padded to a full lane group (lane-dense stores)
DH = 2 * H       # [fwd | bwd] concatenated hidden width
G8 = 8 * H       # 4 gates x 2 directions (gate-group columns, 256 lanes)
SIG = 3 * DH     # sigmoid region (i | f | o), tanh gate g occupies the last DH lanes

# packed-slab row offsets
ROW_WIH = 0
ROW_WHH = 2 * E
ROW_W2 = 2 * E + DH
W_ROWS = 2 * E + DH + H          # 160
MISC_ROWS = 24                   # b | b2 | crf | h0 | c0 (see pack_params)

assert E == H, "BiLSTM_CRF adds embeds to the directional sum -> requires E == H"


# =============================== Pallas kernel ==================================
def bilstm_crf_kernel(
    emb_ref,       # (T*B_PAD, E) f32   row-block t holds x(t) (batch-padded)
    w_ref,         # (W_ROWS, 8H) bf16  rows [wih_blk | whh_blk | w2_pad]
    misc_ref,      # (MISC_ROWS, 8H) f32  rows: b_blk, b2, crf_start, crf_end, trans, h0, c0
    feats_ref,     # out: (T*B_PAD, TAG_PAD) f32   lane-dense emission scores
    tags_ref,      # out: (B_PAD, TAG_PAD) int32   lane-dense decoded tags (col t = tag(t))
    gin_scr,       # scratch: (T*B_PAD, 8H) f32    hoisted input-side gates
):
    # ---- 0) build the reversed input in-kernel (static row-block slices) -------
    x = emb_ref[...]                                                   # (T*B_PAD, E)
    xb = jnp.concatenate(
        [x[(T - 1 - t) * B_PAD:(T - t) * B_PAD, :] for t in range(T)], axis=0)
    x_cat = jnp.concatenate([x, xb], axis=1)                           # (T*B_PAD, 2E)

    wih = w_ref[ROW_WIH:ROW_WIH + 2 * E, :]                            # (2E, 8H) bf16
    whh = w_ref[ROW_WHH:ROW_WHH + DH, :]                               # (2H, 8H) bf16
    w2 = w_ref[ROW_W2:ROW_W2 + H, 0:TAG_PAD]                           # (H, 128)  bf16
    b_in = misc_ref[0:1, :]                                            # (1, 8H)   f32

    # ---- 1) hoisted input projection: one bf16 MXU matmul, both dirs, all t ----
    gin_scr[...] = (
        jnp.dot(x_cat.astype(jnp.bfloat16), wih,
                preferred_element_type=jnp.float32)
        + b_in
    )

    # ---- 2) fused fwd+bwd recurrence: step s = fwd cell @ t=s, bwd cell @ t=T-1-s
    h_cat = misc_ref[8:16, 0:DH]                                       # (B_PAD, 2H) = [h0_f | h0_b]
    c_cat = misc_ref[16:24, 0:DH]
    h_hist = []                                                        # registers, not VMEM
    for s in range(T):                                                 # fully unrolled (T=8)
        gates = gin_scr[s * B_PAD:(s + 1) * B_PAD, :] + jnp.dot(
            h_cat.astype(jnp.bfloat16), whh,
            preferred_element_type=jnp.float32)                        # (B_PAD, 8H) f32
        # sigmoid only over [i | f | o], tanh only over the trailing g block
        sig = jax.nn.sigmoid(gates[:, 0:SIG])
        g = jnp.tanh(gates[:, SIG:G8])                                 # (B_PAD, DH) = [g_f | g_b]
        i = sig[:, 0:DH]
        f = sig[:, DH:2 * DH]
        o = sig[:, 2 * DH:3 * DH]
        c_cat = f * c_cat + i * g
        h_cat = o * jnp.tanh(c_cat)
        h_hist.append(h_cat)        # row s: [h_fwd(time s) | h_bwd(time T-1-s)]

    # ---- 3) emission projection: feats = (embeds + h_fwd + h_bwd) @ W2 + b2 ----
    h_f_all = jnp.concatenate([h_hist[t][:, 0:H] for t in range(T)], axis=0)
    h_b_all = jnp.concatenate([h_hist[T - 1 - t][:, H:DH] for t in range(T)], axis=0)
    summed = x + h_f_all + h_b_all                                     # (T*B_PAD, H) f32
    b2 = misc_ref[1:2, 0:TAG_PAD]
    feats = (
        jnp.dot(summed.astype(jnp.bfloat16), w2,
                preferred_element_type=jnp.float32)
        + b2
    )                                                                  # (T*B_PAD, TAG_PAD)
    feats_ref[...] = feats                                             # lane-dense store

    # ---- 4) fused CRF Viterbi decode (torchcrf convention, NUM_TAGS == 2) ------
    start = misc_ref[2:3, 0:NUM_TAGS]                                  # (1, 2)
    end = misc_ref[3:4, 0:NUM_TAGS]                                    # (1, 2)
    trans = misc_ref[4:6, 0:NUM_TAGS]                                  # (2, 2) trans[prev, next]

    def emit(t):                     # static t -> static slice of the feats value
        return feats[t * B_PAD:(t + 1) * B_PAD, 0:NUM_TAGS]

    score = start + emit(0)          # (B_PAD, 2)
    history = []
    for t in range(1, T):
        cand0 = score[:, 0:1] + trans[0:1, :]     # from previous tag 0 -> (B_PAD, 2)
        cand1 = score[:, 1:2] + trans[1:2, :]     # from previous tag 1 -> (B_PAD, 2)
        history.append((cand1 > cand0).astype(jnp.int32))   # first-max tie-break
        score = jnp.maximum(cand0, cand1) + emit(t)
    score = score + end
    last = (score[:, 1:2] > score[:, 0:1]).astype(jnp.int32)           # (B_PAD, 1)

    # backtrace accumulated in registers; ONE unmasked (8, 128) store at the end
    lane = lax.broadcasted_iota(jnp.int32, (B_PAD, TAG_PAD), 1)
    tags_acc = jnp.where(lane == (T - 1), last, 0)
    cur = last
    for t in range(T - 2, -1, -1):
        bp = history[t]                                                # (B_PAD, 2)
        cur = jnp.where(cur == 1, bp[:, 1:2], bp[:, 0:1])
        tags_acc = jnp.where(lane == t, cur, tags_acc)
    tags_ref[...] = tags_acc


# ========================= parameter packing (layout plumbing) ===================
# canonical PyTorch gate order [i | f | g | o]  ->  packed group order [i | f | o | g]
# (tanh gate last, so sigmoid/tanh split cleanly inside the kernel)
GATE_ORDER = (0, 1, 3, 2)


def _interleave_blockdiag(wf_t, wb_t):
    """wf_t: (df, 4H), wb_t: (db, 4H) -> (df+db, 8H) block-diagonal matrix whose columns
    are gate-grouped / direction-interleaved: [i_f i_b | f_f f_b | o_f o_b | g_f g_b]."""
    df, db = wf_t.shape[0], wb_t.shape[0]
    zf = jnp.zeros((db, H), jnp.float32)
    zb = jnp.zeros((df, H), jnp.float32)
    blocks = []
    for k in GATE_ORDER:
        blocks.append(jnp.concatenate([wf_t[:, k * H:(k + 1) * H], zf], axis=0))
        blocks.append(jnp.concatenate([zb, wb_t[:, k * H:(k + 1) * H]], axis=0))
    return jnp.concatenate(blocks, axis=1)


def _interleave_bias(bf, bb):
    """bf, bb: (1, 4H) -> (1, 8H) in the same packed column order."""
    blocks = []
    for k in GATE_ORDER:
        blocks.append(bf[:, k * H:(k + 1) * H])
        blocks.append(bb[:, k * H:(k + 1) * H])
    return jnp.concatenate(blocks, axis=1)


def pack_params(params):
    """One-time repacking into the kernel's layouts (outside the hot path).

    Returns exactly two arrays (-> 2 weight DMAs per kernel launch):
      w_slab : (W_ROWS, 8H) bf16  [wih_blk ; whh_blk ; w2 (tag-padded)]
      misc   : (MISC_ROWS, 8H) f32  biases, CRF params, h0, c0
    """
    wih_blk = _interleave_blockdiag(params["wih_f"], params["wih_b"])   # (2E, 8H)
    whh_blk = _interleave_blockdiag(params["whh_f"], params["whh_b"])   # (2H, 8H)
    w2_pad = jnp.zeros((H, G8), jnp.float32).at[:, :NUM_TAGS].set(params["w2"])
    w_slab = jnp.concatenate([wih_blk, whh_blk, w2_pad], axis=0).astype(jnp.bfloat16)

    b_blk = _interleave_bias(params["b_f"], params["b_b"])              # (1, 8H)
    h0_cat = (jnp.zeros((B_PAD, DH), jnp.float32)
              .at[:B, :H].set(params["h0"][0])
              .at[:B, H:].set(params["h0"][1]))
    c0_cat = (jnp.zeros((B_PAD, DH), jnp.float32)
              .at[:B, :H].set(params["c0"][0])
              .at[:B, H:].set(params["c0"][1]))

    misc = jnp.zeros((MISC_ROWS, G8), jnp.float32)
    misc = misc.at[0, :].set(b_blk[0])                                  # fused bias
    misc = misc.at[1, :NUM_TAGS].set(params["b2"][0])                   # hidden2tag bias
    misc = misc.at[2, :NUM_TAGS].set(params["crf_start"])
    misc = misc.at[3, :NUM_TAGS].set(params["crf_end"])
    misc = misc.at[4:6, :NUM_TAGS].set(params["crf_trans"])             # trans[prev, next]
    misc = misc.at[8:16, :DH].set(h0_cat)
    misc = misc.at[16:24, :DH].set(c0_cat)
    return {"w_slab": w_slab, "misc": misc}


# ================================ fused forward ==================================
@jax.jit
def bilstm_crf_forward(embeds_btE, packed):
    """Mirrors BiLSTM_CRF.forward: returns (lstm_feats permuted to (T,B,K), decode (B,T))."""
    # (B, T, E) -> seq-major, batch padded to 8 sublanes, flattened to (T*B_PAD, E).
    # No reversed/duplicated copy here: the kernel builds the backward-direction view.
    emb = jnp.transpose(embeds_btE.astype(jnp.float32), (1, 0, 2))         # (T, B, E)
    emb_flat = (jnp.zeros((T, B_PAD, E), jnp.float32)
                .at[:, :B, :].set(emb)
                .reshape(T * B_PAD, E))

    vmem = pl.BlockSpec(memory_space=pltpu.MemorySpace.VMEM)
    feats_pad, tags_pad = pl.pallas_call(
        bilstm_crf_kernel,
        out_shape=(
            jax.ShapeDtypeStruct((T * B_PAD, TAG_PAD), jnp.float32),
            jax.ShapeDtypeStruct((B_PAD, TAG_PAD), jnp.int32),
        ),
        in_specs=[vmem, vmem, vmem],                 # 3 input DMAs total
        out_specs=(vmem, vmem),
        scratch_shapes=[
            pltpu.VMEM((T * B_PAD, G8), jnp.float32),   # hoisted input-side gates
        ],
        compiler_params=pltpu.CompilerParams(vmem_limit_bytes=32 * 1024 * 1024),
    )(emb_flat, packed["w_slab"], packed["misc"])

    feats = feats_pad.reshape(T, B_PAD, TAG_PAD)[:, :B, :NUM_TAGS]   # (T, B, NUM_TAGS)
    tags = tags_pad[:B, :T]                                          # (B, T)
    return feats, tags


# ================================ parameter init =================================
def init_params(key):
    ks = jax.random.split(key, 14)
    k = 1.0 / jnp.sqrt(jnp.float32(H))

    def u(key, shape, lim):
        return jax.random.uniform(key, shape, jnp.float32, -lim, lim)

    return {
        # LSTM forward direction (weights stored transposed: x @ W), gate order [i|f|g|o]
        "wih_f": u(ks[0], (E, 4 * H), k),
        "whh_f": u(ks[1], (H, 4 * H), k),
        "b_f":   u(ks[2], (1, 4 * H), k),          # b_ih + b_hh fused
        # LSTM backward direction
        "wih_b": u(ks[3], (E, 4 * H), k),
        "whh_b": u(ks[4], (H, 4 * H), k),
        "b_b":   u(ks[5], (1, 4 * H), k),
        # init_hidden(): torch.randn -> deterministic normal here
        "h0": jax.random.normal(ks[6], (2, B, H), jnp.float32),
        "c0": jax.random.normal(ks[7], (2, B, H), jnp.float32),
        # hidden2tag Linear(hidden_dim, NUM_TAGS), stored transposed
        "w2": u(ks[8], (H, NUM_TAGS), k),
        "b2": u(ks[9], (1, NUM_TAGS), k),
        # CRF parameters (torchcrf init: uniform(-0.1, 0.1)); trans is [prev, next]
        "crf_start": u(ks[10], (NUM_TAGS,), 0.1),
        "crf_end":   u(ks[11], (NUM_TAGS,), 0.1),
        "crf_trans": u(ks[12], (NUM_TAGS, NUM_TAGS), 0.1),
    }


# ====================================== main =====================================
if __name__ == "__main__":
    key = jax.random.PRNGKey(0)
    k_in, k_par = jax.random.split(key)
    embeds = jax.random.normal(k_in, (B, T, E), jnp.float32)     # (batch, seq, emb)
    params = init_params(k_par)
    packed = pack_params(params)

    feats, tags = bilstm_crf_forward(embeds, packed)
    jax.block_until_ready((feats, tags))

    assert feats.shape == (T, B, NUM_TAGS)
    assert tags.shape == (B, T)
    assert bool(jnp.isfinite(feats).all())
    assert bool(((tags == 0) | (tags == 1)).all())
    print("KERNEL_OK")
</pallas_src>

<mosaic_0001>
module attributes {stable_mosaic.version = 11 : i64} {
  func.func @bilstm_crf_kernel(%arg0: memref<64x32xf32, #tpu.memory_space<vmem>>, %arg1: memref<160x256xbf16, #tpu.memory_space<vmem>>, %arg2: memref<24x256xf32, #tpu.memory_space<vmem>>, %arg3: memref<64x128xf32, #tpu.memory_space<vmem>>, %arg4: memref<8x128xi32, #tpu.memory_space<vmem>>, %arg5: memref<64x256xf32, #tpu.memory_space<vmem>>) attributes {dimension_semantics = [], scalar_prefetch = 0 : i64, scratch_operands = 1 : i64, tpu.core_type = #tpu.core_type<tc>} {
    %c0 = arith.constant 0 : index
    %c0_0 = arith.constant 0 : index
    %0 = vector.load %arg0[%c0, %c0_0] : memref<64x32xf32, #tpu.memory_space<vmem>>, vector<64x32xf32>
    %1 = vector.extract_strided_slice %0 {offsets = [56, 0], sizes = [8, 32], strides = [1, 1]} : vector<64x32xf32> to vector<8x32xf32>
    %2 = vector.extract_strided_slice %0 {offsets = [48, 0], sizes = [8, 32], strides = [1, 1]} : vector<64x32xf32> to vector<8x32xf32>
    %3 = vector.extract_strided_slice %0 {offsets = [40, 0], sizes = [8, 32], strides = [1, 1]} : vector<64x32xf32> to vector<8x32xf32>
    %4 = vector.extract_strided_slice %0 {offsets = [32, 0], sizes = [8, 32], strides = [1, 1]} : vector<64x32xf32> to vector<8x32xf32>
    %5 = vector.extract_strided_slice %0 {offsets = [24, 0], sizes = [8, 32], strides = [1, 1]} : vector<64x32xf32> to vector<8x32xf32>
    %6 = vector.extract_strided_slice %0 {offsets = [16, 0], sizes = [8, 32], strides = [1, 1]} : vector<64x32xf32> to vector<8x32xf32>
    %7 = vector.extract_strided_slice %0 {offsets = [8, 0], sizes = [8, 32], strides = [1, 1]} : vector<64x32xf32> to vector<8x32xf32>
    %8 = vector.extract_strided_slice %0 {offsets = [0, 0], sizes = [8, 32], strides = [1, 1]} : vector<64x32xf32> to vector<8x32xf32>
    %9 = tpu.concatenate %1, %2, %3, %4, %5, %6, %7, %8 in 0 : vector<8x32xf32>, vector<8x32xf32>, vector<8x32xf32>, vector<8x32xf32>, vector<8x32xf32>, vector<8x32xf32>, vector<8x32xf32>, vector<8x32xf32> -> vector<64x32xf32>
    %10 = tpu.concatenate %0, %9 in 1 : vector<64x32xf32>, vector<64x32xf32> -> vector<64x64xf32>
    %c0_1 = arith.constant 0 : index
    %c0_2 = arith.constant 0 : index
    %11 = vector.load %arg1[%c0_1, %c0_2] : memref<160x256xbf16, #tpu.memory_space<vmem>>, vector<64x256xbf16>
    %c64 = arith.constant 64 : index
    %c0_3 = arith.constant 0 : index
    %12 = vector.load %arg1[%c64, %c0_3] : memref<160x256xbf16, #tpu.memory_space<vmem>>, vector<64x256xbf16>
    %c128 = arith.constant 128 : index
    %c0_4 = arith.constant 0 : index
    %13 = vector.load %arg1[%c128, %c0_4] : memref<160x256xbf16, #tpu.memory_space<vmem>>, vector<32x128xbf16>
    %c0_5 = arith.constant 0 : index
    %c0_6 = arith.constant 0 : index
    %14 = vector.load %arg2[%c0_5, %c0_6] : memref<24x256xf32, #tpu.memory_space<vmem>>, vector<1x256xf32>
    %15 = arith.truncf %10 : vector<64x64xf32> to vector<64x64xbf16>
    %cst = arith.constant dense<0.000000e+00> : vector<64x256xf32>
    %16 = tpu.matmul %15, %11, %cst {dimension_numbers = #tpu.dot_dimension_numbers<[1], [0], [0], [1], [0, 0, 1, 1], [], []>} : vector<64x64xbf16>, vector<64x256xbf16>, vector<64x256xf32> -> vector<64x256xf32>
    %17 = vector.broadcast %14 : vector<1x256xf32> to vector<64x256xf32>
    %18 = arith.addf %16, %17 : vector<64x256xf32>
    %c0_7 = arith.constant 0 : index
    %c0_8 = arith.constant 0 : index
    %19 = vector.load %arg5[%c0_7, %c0_8] : memref<64x256xf32, #tpu.memory_space<vmem>>, vector<64x256xf32>
    tpu.vector_store %arg5[%c0_7, %c0_8], %18 {strides = array<i32>} : memref<64x256xf32, #tpu.memory_space<vmem>>, vector<64x256xf32>,
    %c8 = arith.constant 8 : index
    %c0_9 = arith.constant 0 : index
    %20 = vector.load %arg2[%c8, %c0_9] : memref<24x256xf32, #tpu.memory_space<vmem>>, vector<8x64xf32>
    %c16 = arith.constant 16 : index
    %c0_10 = arith.constant 0 : index
    %21 = vector.load %arg2[%c16, %c0_10] : memref<24x256xf32, #tpu.memory_space<vmem>>, vector<8x64xf32>
    %c0_11 = arith.constant 0 : index
    %c0_12 = arith.constant 0 : index
    %22 = vector.load %arg5[%c0_11, %c0_12] : memref<64x256xf32, #tpu.memory_space<vmem>>, vector<8x256xf32>
    %23 = arith.truncf %20 : vector<8x64xf32> to vector<8x64xbf16>
    %cst_13 = arith.constant dense<0.000000e+00> : vector<8x256xf32>
    %24 = tpu.matmul %23, %12, %cst_13 {dimension_numbers = #tpu.dot_dimension_numbers<[1], [0], [0], [1], [0, 0, 1, 1], [], []>} : vector<8x64xbf16>, vector<64x256xbf16>, vector<8x256xf32> -> vector<8x256xf32>
    %25 = arith.addf %22, %24 : vector<8x256xf32>
    %26 = vector.extract_strided_slice %25 {offsets = [0, 0], sizes = [8, 192], strides = [1, 1]} : vector<8x256xf32> to vector<8x192xf32>
    %27 = arith.negf %26 : vector<8x192xf32>
    %28 = math.exp %27 : vector<8x192xf32>
    %cst_14 = arith.constant 1.000000e+00 : f32
    %29 = vector.broadcast %cst_14 : f32 to vector<8x192xf32>
    %30 = arith.addf %29, %28 : vector<8x192xf32>
    %31 = arith.divf %29, %30 : vector<8x192xf32>
    %32 = vector.extract_strided_slice %25 {offsets = [0, 192], sizes = [8, 64], strides = [1, 1]} : vector<8x256xf32> to vector<8x64xf32>
    %33 = math.tanh %32 : vector<8x64xf32>
    %34 = vector.extract_strided_slice %31 {offsets = [0, 0], sizes = [8, 64], strides = [1, 1]} : vector<8x192xf32> to vector<8x64xf32>
    %35 = vector.extract_strided_slice %31 {offsets = [0, 64], sizes = [8, 64], strides = [1, 1]} : vector<8x192xf32> to vector<8x64xf32>
    %36 = vector.extract_strided_slice %31 {offsets = [0, 128], sizes = [8, 64], strides = [1, 1]} : vector<8x192xf32> to vector<8x64xf32>
    %37 = arith.mulf %35, %21 : vector<8x64xf32>
    %38 = arith.mulf %34, %33 : vector<8x64xf32>
    %39 = arith.addf %37, %38 : vector<8x64xf32>
    %40 = math.tanh %39 : vector<8x64xf32>
    %41 = arith.mulf %36, %40 : vector<8x64xf32>
    %c8_15 = arith.constant 8 : index
    %c0_16 = arith.constant 0 : index
    %42 = vector.load %arg5[%c8_15, %c0_16] : memref<64x256xf32, #tpu.memory_space<vmem>>, vector<8x256xf32>
    %43 = arith.truncf %41 : vector<8x64xf32> to vector<8x64xbf16>
    %cst_17 = arith.constant dense<0.000000e+00> : vector<8x256xf32>
    %44 = tpu.matmul %43, %12, %cst_17 {dimension_numbers = #tpu.dot_dimension_numbers<[1], [0], [0], [1], [0, 0, 1, 1], [], []>} : vector<8x64xbf16>, vector<64x256xbf16>, vector<8x256xf32> -> vector<8x256xf32>
    %45 = arith.addf %42, %44 : vector<8x256xf32>
    %46 = vector.extract_strided_slice %45 {offsets = [0, 0], sizes = [8, 192], strides = [1, 1]} : vector<8x256xf32> to vector<8x192xf32>
    %47 = arith.negf %46 : vector<8x192xf32>
    %48 = math.exp %47 : vector<8x192xf32>
    %cst_18 = arith.constant 1.000000e+00 : f32
    %49 = vector.broadcast %cst_18 : f32 to vector<8x192xf32>
    %50 = arith.addf %49, %48 : vector<8x192xf32>
    %51 = arith.divf %49, %50 : vector<8x192xf32>
    %52 = vector.extract_strided_slice %45 {offsets = [0, 192], sizes = [8, 64], strides = [1, 1]} : vector<8x256xf32> to vector<8x64xf32>
    %53 = math.tanh %52 : vector<8x64xf32>
    %54 = vector.extract_strided_slice %51 {offsets = [0, 0], sizes = [8, 64], strides = [1, 1]} : vector<8x192xf32> to vector<8x64xf32>
    %55 = vector.extract_strided_slice %51 {offsets = [0, 64], sizes = [8, 64], strides = [1, 1]} : vector<8x192xf32> to vector<8x64xf32>
    %56 = vector.extract_strided_slice %51 {offsets = [0, 128], sizes = [8, 64], strides = [1, 1]} : vector<8x192xf32> to vector<8x64xf32>
    %57 = arith.mulf %55, %39 : vector<8x64xf32>
    %58 = arith.mulf %54, %53 : vector<8x64xf32>
    %59 = arith.addf %57, %58 : vector<8x64xf32>
    %60 = math.tanh %59 : vector<8x64xf32>
    %61 = arith.mulf %56, %60 : vector<8x64xf32>
    %c16_19 = arith.constant 16 : index
    %c0_20 = arith.constant 0 : index
    %62 = vector.load %arg5[%c16_19, %c0_20] : memref<64x256xf32, #tpu.memory_space<vmem>>, vector<8x256xf32>
    %63 = arith.truncf %61 : vector<8x64xf32> to vector<8x64xbf16>
    %cst_21 = arith.constant dense<0.000000e+00> : vector<8x256xf32>
    %64 = tpu.matmul %63, %12, %cst_21 {dimension_numbers = #tpu.dot_dimension_numbers<[1], [0], [0], [1], [0, 0, 1, 1], [], []>} : vector<8x64xbf16>, vector<64x256xbf16>, vector<8x256xf32> -> vector<8x256xf32>
    %65 = arith.addf %62, %64 : vector<8x256xf32>
    %66 = vector.extract_strided_slice %65 {offsets = [0, 0], sizes = [8, 192], strides = [1, 1]} : vector<8x256xf32> to vector<8x192xf32>
    %67 = arith.negf %66 : vector<8x192xf32>
    %68 = math.exp %67 : vector<8x192xf32>
    %cst_22 = arith.constant 1.000000e+00 : f32
    %69 = vector.broadcast %cst_22 : f32 to vector<8x192xf32>
    %70 = arith.addf %69, %68 : vector<8x192xf32>
    %71 = arith.divf %69, %70 : vector<8x192xf32>
    %72 = vector.extract_strided_slice %65 {offsets = [0, 192], sizes = [8, 64], strides = [1, 1]} : vector<8x256xf32> to vector<8x64xf32>
    %73 = math.tanh %72 : vector<8x64xf32>
    %74 = vector.extract_strided_slice %71 {offsets = [0, 0], sizes = [8, 64], strides = [1, 1]} : vector<8x192xf32> to vector<8x64xf32>
    %75 = vector.extract_strided_slice %71 {offsets = [0, 64], sizes = [8, 64], strides = [1, 1]} : vector<8x192xf32> to vector<8x64xf32>
    %76 = vector.extract_strided_slice %71 {offsets = [0, 128], sizes = [8, 64], strides = [1, 1]} : vector<8x192xf32> to vector<8x64xf32>
    %77 = arith.mulf %75, %59 : vector<8x64xf32>
    %78 = arith.mulf %74, %73 : vector<8x64xf32>
    %79 = arith.addf %77, %78 : vector<8x64xf32>
    %80 = math.tanh %79 : vector<8x64xf32>
    %81 = arith.mulf %76, %80 : vector<8x64xf32>
    %c24 = arith.constant 24 : index
    %c0_23 = arith.constant 0 : index
    %82 = vector.load %arg5[%c24, %c0_23] : memref<64x256xf32, #tpu.memory_space<vmem>>, vector<8x256xf32>
    %83 = arith.truncf %81 : vector<8x64xf32> to vector<8x64xbf16>
    %cst_24 = arith.constant dense<0.000000e+00> : vector<8x256xf32>
    %84 = tpu.matmul %83, %12, %cst_24 {dimension_numbers = #tpu.dot_dimension_numbers<[1], [0], [0], [1], [0, 0, 1, 1], [], []>} : vector<8x64xbf16>, vector<64x256xbf16>, vector<8x256xf32> -> vector<8x256xf32>
    %85 = arith.addf %82, %84 : vector<8x256xf32>
    %86 = vector.extract_strided_slice %85 {offsets = [0, 0], sizes = [8, 192], strides = [1, 1]} : vector<8x256xf32> to vector<8x192xf32>
    %87 = arith.negf %86 : vector<8x192xf32>
    %88 = math.exp %87 : vector<8x192xf32>
    %cst_25 = arith.constant 1.000000e+00 : f32
    %89 = vector.broadcast %cst_25 : f32 to vector<8x192xf32>
    %90 = arith.addf %89, %88 : vector<8x192xf32>
    %91 = arith.divf %89, %90 : vector<8x192xf32>
    %92 = vector.extract_strided_slice %85 {offsets = [0, 192], sizes = [8, 64], strides = [1, 1]} : vector<8x256xf32> to vector<8x64xf32>
    %93 = math.tanh %92 : vector<8x64xf32>
    %94 = vector.extract_strided_slice %91 {offsets = [0, 0], sizes = [8, 64], strides = [1, 1]} : vector<8x192xf32> to vector<8x64xf32>
    %95 = vector.extract_strided_slice %91 {offsets = [0, 64], sizes = [8, 64], strides = [1, 1]} : vector<8x192xf32> to vector<8x64xf32>
    %96 = vector.extract_strided_slice %91 {offsets = [0, 128], sizes = [8, 64], strides = [1, 1]} : vector<8x192xf32> to vector<8x64xf32>
    %97 = arith.mulf %95, %79 : vector<8x64xf32>
    %98 = arith.mulf %94, %93 : vector<8x64xf32>
    %99 = arith.addf %97, %98 : vector<8x64xf32>
    %100 = math.tanh %99 : vector<8x64xf32>
    %101 = arith.mulf %96, %100 : vector<8x64xf32>
    %c32 = arith.constant 32 : index
    %c0_26 = arith.constant 0 : index
    %102 = vector.load %arg5[%c32, %c0_26] : memref<64x256xf32, #tpu.memory_space<vmem>>, vector<8x256xf32>
    %103 = arith.truncf %101 : vector<8x64xf32> to vector<8x64xbf16>
    %cst_27 = arith.constant dense<0.000000e+00> : vector<8x256xf32>
    %104 = tpu.matmul %103, %12, %cst_27 {dimension_numbers = #tpu.dot_dimension_numbers<[1], [0], [0], [1], [0, 0, 1, 1], [], []>} : vector<8x64xbf16>, vector<64x256xbf16>, vector<8x256xf32> -> vector<8x256xf32>
    %105 = arith.addf %102, %104 : vector<8x256xf32>
    %106 = vector.extract_strided_slice %105 {offsets = [0, 0], sizes = [8, 192], strides = [1, 1]} : vector<8x256xf32> to vector<8x192xf32>
    %107 = arith.negf %106 : vector<8x192xf32>
    %108 = math.exp %107 : vector<8x192xf32>
    %cst_28 = arith.constant 1.000000e+00 : f32
    %109 = vector.broadcast %cst_28 : f32 to vector<8x192xf32>
    %110 = arith.addf %109, %108 : vector<8x192xf32>
    %111 = arith.divf %109, %110 : vector<8x192xf32>
    %112 = vector.extract_strided_slice %105 {offsets = [0, 192], sizes = [8, 64], strides = [1, 1]} : vector<8x256xf32> to vector<8x64xf32>
    %113 = math.tanh %112 : vector<8x64xf32>
    %114 = vector.extract_strided_slice %111 {offsets = [0, 0], sizes = [8, 64], strides = [1, 1]} : vector<8x192xf32> to vector<8x64xf32>
    %115 = vector.extract_strided_slice %111 {offsets = [0, 64], sizes = [8, 64], strides = [1, 1]} : vector<8x192xf32> to vector<8x64xf32>
    %116 = vector.extract_strided_slice %111 {offsets = [0, 128], sizes = [8, 64], strides = [1, 1]} : vector<8x192xf32> to vector<8x64xf32>
    %117 = arith.mulf %115, %99 : vector<8x64xf32>
    %118 = arith.mulf %114, %113 : vector<8x64xf32>
    %119 = arith.addf %117, %118 : vector<8x64xf32>
    %120 = math.tanh %119 : vector<8x64xf32>
    %121 = arith.mulf %116, %120 : vector<8x64xf32>
    %c40 = arith.constant 40 : index
    %c0_29 = arith.constant 0 : index
    %122 = vector.load %arg5[%c40, %c0_29] : memref<64x256xf32, #tpu.memory_space<vmem>>, vector<8x256xf32>
    %123 = arith.truncf %121 : vector<8x64xf32> to vector<8x64xbf16>
    %cst_30 = arith.constant dense<0.000000e+00> : vector<8x256xf32>
    %124 = tpu.matmul %123, %12, %cst_30 {dimension_numbers = #tpu.dot_dimension_numbers<[1], [0], [0], [1], [0, 0, 1, 1], [], []>} : vector<8x64xbf16>, vector<64x256xbf16>, vector<8x256xf32> -> vector<8x256xf32>
    %125 = arith.addf %122, %124 : vector<8x256xf32>
    %126 = vector.extract_strided_slice %125 {offsets = [0, 0], sizes = [8, 192], strides = [1, 1]} : vector<8x256xf32> to vector<8x192xf32>
    %127 = arith.negf %126 : vector<8x192xf32>
    %128 = math.exp %127 : vector<8x192xf32>
    %cst_31 = arith.constant 1.000000e+00 : f32
    %129 = vector.broadcast %cst_31 : f32 to vector<8x192xf32>
    %130 = arith.addf %129, %128 : vector<8x192xf32>
    %131 = arith.divf %129, %130 : vector<8x192xf32>
    %132 = vector.extract_strided_slice %125 {offsets = [0, 192], sizes = [8, 64], strides = [1, 1]} : vector<8x256xf32> to vector<8x64xf32>
    %133 = math.tanh %132 : vector<8x64xf32>
    %134 = vector.extract_strided_slice %131 {offsets = [0, 0], sizes = [8, 64], strides = [1, 1]} : vector<8x192xf32> to vector<8x64xf32>
    %135 = vector.extract_strided_slice %131 {offsets = [0, 64], sizes = [8, 64], strides = [1, 1]} : vector<8x192xf32> to vector<8x64xf32>
    %136 = vector.extract_strided_slice %131 {offsets = [0, 128], sizes = [8, 64], strides = [1, 1]} : vector<8x192xf32> to vector<8x64xf32>
    %137 = arith.mulf %135, %119 : vector<8x64xf32>
    %138 = arith.mulf %134, %133 : vector<8x64xf32>
    %139 = arith.addf %137, %138 : vector<8x64xf32>
    %140 = math.tanh %139 : vector<8x64xf32>
    %141 = arith.mulf %136, %140 : vector<8x64xf32>
    %c48 = arith.constant 48 : index
    %c0_32 = arith.constant 0 : index
    %142 = vector.load %arg5[%c48, %c0_32] : memref<64x256xf32, #tpu.memory_space<vmem>>, vector<8x256xf32>
    %143 = arith.truncf %141 : vector<8x64xf32> to vector<8x64xbf16>
    %cst_33 = arith.constant dense<0.000000e+00> : vector<8x256xf32>
    %144 = tpu.matmul %143, %12, %cst_33 {dimension_numbers = #tpu.dot_dimension_numbers<[1], [0], [0], [1], [0, 0, 1, 1], [], []>} : vector<8x64xbf16>, vector<64x256xbf16>, vector<8x256xf32> -> vector<8x256xf32>
    %145 = arith.addf %142, %144 : vector<8x256xf32>
    %146 = vector.extract_strided_slice %145 {offsets = [0, 0], sizes = [8, 192], strides = [1, 1]} : vector<8x256xf32> to vector<8x192xf32>
    %147 = arith.negf %146 : vector<8x192xf32>
    %148 = math.exp %147 : vector<8x192xf32>
    %cst_34 = arith.constant 1.000000e+00 : f32
    %149 = vector.broadcast %cst_34 : f32 to vector<8x192xf32>
    %150 = arith.addf %149, %148 : vector<8x192xf32>
    %151 = arith.divf %149, %150 : vector<8x192xf32>
    %152 = vector.extract_strided_slice %145 {offsets = [0, 192], sizes = [8, 64], strides = [1, 1]} : vector<8x256xf32> to vector<8x64xf32>
    %153 = math.tanh %152 : vector<8x64xf32>
    %154 = vector.extract_strided_slice %151 {offsets = [0, 0], sizes = [8, 64], strides = [1, 1]} : vector<8x192xf32> to vector<8x64xf32>
    %155 = vector.extract_strided_slice %151 {offsets = [0, 64], sizes = [8, 64], strides = [1, 1]} : vector<8x192xf32> to vector<8x64xf32>
    %156 = vector.extract_strided_slice %151 {offsets = [0, 128], sizes = [8, 64], strides = [1, 1]} : vector<8x192xf32> to vector<8x64xf32>
    %157 = arith.mulf %155, %139 : vector<8x64xf32>
    %158 = arith.mulf %154, %153 : vector<8x64xf32>
    %159 = arith.addf %157, %158 : vector<8x64xf32>
    %160 = math.tanh %159 : vector<8x64xf32>
    %161 = arith.mulf %156, %160 : vector<8x64xf32>
    %c56 = arith.constant 56 : index
    %c0_35 = arith.constant 0 : index
    %162 = vector.load %arg5[%c56, %c0_35] : memref<64x256xf32, #tpu.memory_space<vmem>>, vector<8x256xf32>
    %163 = arith.truncf %161 : vector<8x64xf32> to vector<8x64xbf16>
    %cst_36 = arith.constant dense<0.000000e+00> : vector<8x256xf32>
    %164 = tpu.matmul %163, %12, %cst_36 {dimension_numbers = #tpu.dot_dimension_numbers<[1], [0], [0], [1], [0, 0, 1, 1], [], []>} : vector<8x64xbf16>, vector<64x256xbf16>, vector<8x256xf32> -> vector<8x256xf32>
    %165 = arith.addf %162, %164 : vector<8x256xf32>
    %166 = vector.extract_strided_slice %165 {offsets = [0, 0], sizes = [8, 192], strides = [1, 1]} : vector<8x256xf32> to vector<8x192xf32>
    %167 = arith.negf %166 : vector<8x192xf32>
    %168 = math.exp %167 : vector<8x192xf32>
    %cst_37 = arith.constant 1.000000e+00 : f32
    %169 = vector.broadcast %cst_37 : f32 to vector<8x192xf32>
    %170 = arith.addf %169, %168 : vector<8x192xf32>
    %171 = arith.divf %169, %170 : vector<8x192xf32>
    %172 = vector.extract_strided_slice %165 {offsets = [0, 192], sizes = [8, 64], strides = [1, 1]} : vector<8x256xf32> to vector<8x64xf32>
    %173 = math.tanh %172 : vector<8x64xf32>
    %174 = vector.extract_strided_slice %171 {offsets = [0, 0], sizes = [8, 64], strides = [1, 1]} : vector<8x192xf32> to vector<8x64xf32>
    %175 = vector.extract_strided_slice %171 {offsets = [0, 64], sizes = [8, 64], strides = [1, 1]} : vector<8x192xf32> to vector<8x64xf32>
    %176 = vector.extract_strided_slice %171 {offsets = [0, 128], sizes = [8, 64], strides = [1, 1]} : vector<8x192xf32> to vector<8x64xf32>
    %177 = arith.mulf %175, %159 : vector<8x64xf32>
    %178 = arith.mulf %174, %173 : vector<8x64xf32>
    %179 = arith.addf %177, %178 : vector<8x64xf32>
    %180 = math.tanh %179 : vector<8x64xf32>
    %181 = arith.mulf %176, %180 : vector<8x64xf32>
    %182 = vector.extract_strided_slice %41 {offsets = [0, 0], sizes = [8, 32], strides = [1, 1]} : vector<8x64xf32> to vector<8x32xf32>
    %183 = vector.extract_strided_slice %61 {offsets = [0, 0], sizes = [8, 32], strides = [1, 1]} : vector<8x64xf32> to vector<8x32xf32>
    %184 = vector.extract_strided_slice %81 {offsets = [0, 0], sizes = [8, 32], strides = [1, 1]} : vector<8x64xf32> to vector<8x32xf32>
    %185 = vector.extract_strided_slice %101 {offsets = [0, 0], sizes = [8, 32], strides = [1, 1]} : vector<8x64xf32> to vector<8x32xf32>
    %186 = vector.extract_strided_slice %121 {offsets = [0, 0], sizes = [8, 32], strides = [1, 1]} : vector<8x64xf32> to vector<8x32xf32>
    %187 = vector.extract_strided_slice %141 {offsets = [0, 0], sizes = [8, 32], strides = [1, 1]} : vector<8x64xf32> to vector<8x32xf32>
    %188 = vector.extract_strided_slice %161 {offsets = [0, 0], sizes = [8, 32], strides = [1, 1]} : vector<8x64xf32> to vector<8x32xf32>
    %189 = vector.extract_strided_slice %181 {offsets = [0, 0], sizes = [8, 32], strides = [1, 1]} : vector<8x64xf32> to vector<8x32xf32>
    %190 = tpu.concatenate %182, %183, %184, %185, %186, %187, %188, %189 in 0 : vector<8x32xf32>, vector<8x32xf32>, vector<8x32xf32>, vector<8x32xf32>, vector<8x32xf32>, vector<8x32xf32>, vector<8x32xf32>, vector<8x32xf32> -> vector<64x32xf32>
    %191 = vector.extract_strided_slice %181 {offsets = [0, 32], sizes = [8, 32], strides = [1, 1]} : vector<8x64xf32> to vector<8x32xf32>
    %192 = vector.extract_strided_slice %161 {offsets = [0, 32], sizes = [8, 32], strides = [1, 1]} : vector<8x64xf32> to vector<8x32xf32>
    %193 = vector.extract_strided_slice %141 {offsets = [0, 32], sizes = [8, 32], strides = [1, 1]} : vector<8x64xf32> to vector<8x32xf32>
    %194 = vector.extract_strided_slice %121 {offsets = [0, 32], sizes = [8, 32], strides = [1, 1]} : vector<8x64xf32> to vector<8x32xf32>
    %195 = vector.extract_strided_slice %101 {offsets = [0, 32], sizes = [8, 32], strides = [1, 1]} : vector<8x64xf32> to vector<8x32xf32>
    %196 = vector.extract_strided_slice %81 {offsets = [0, 32], sizes = [8, 32], strides = [1, 1]} : vector<8x64xf32> to vector<8x32xf32>
    %197 = vector.extract_strided_slice %61 {offsets = [0, 32], sizes = [8, 32], strides = [1, 1]} : vector<8x64xf32> to vector<8x32xf32>
    %198 = vector.extract_strided_slice %41 {offsets = [0, 32], sizes = [8, 32], strides = [1, 1]} : vector<8x64xf32> to vector<8x32xf32>
    %199 = tpu.concatenate %191, %192, %193, %194, %195, %196, %197, %198 in 0 : vector<8x32xf32>, vector<8x32xf32>, vector<8x32xf32>, vector<8x32xf32>, vector<8x32xf32>, vector<8x32xf32>, vector<8x32xf32>, vector<8x32xf32> -> vector<64x32xf32>
    %200 = arith.addf %0, %190 : vector<64x32xf32>
    %201 = arith.addf %200, %199 : vector<64x32xf32>
    %c1 = arith.constant 1 : index
    %c0_38 = arith.constant 0 : index
    %202 = vector.load %arg2[%c1, %c0_38] : memref<24x256xf32, #tpu.memory_space<vmem>>, vector<1x128xf32>
    %203 = arith.truncf %201 : vector<64x32xf32> to vector<64x32xbf16>
    %cst_39 = arith.constant dense<0.000000e+00> : vector<64x128xf32>
    %204 = tpu.matmul %203, %13, %cst_39 {dimension_numbers = #tpu.dot_dimension_numbers<[1], [0], [0], [1], [0, 0, 1, 1], [], []>} : vector<64x32xbf16>, vector<32x128xbf16>, vector<64x128xf32> -> vector<64x128xf32>
    %205 = vector.broadcast %202 : vector<1x128xf32> to vector<64x128xf32>
    %206 = arith.addf %204, %205 : vector<64x128xf32>
    %c0_40 = arith.constant 0 : index
    %c0_41 = arith.constant 0 : index
    %207 = vector.load %arg3[%c0_40, %c0_41] : memref<64x128xf32, #tpu.memory_space<vmem>>, vector<64x128xf32>
    tpu.vector_store %arg3[%c0_40, %c0_41], %206 {strides = array<i32>} : memref<64x128xf32, #tpu.memory_space<vmem>>, vector<64x128xf32>,
    %c2 = arith.constant 2 : index
    %c0_42 = arith.constant 0 : index
    %208 = vector.load %arg2[%c2, %c0_42] : memref<24x256xf32, #tpu.memory_space<vmem>>, vector<1x2xf32>
    %c3 = arith.constant 3 : index
    %c0_43 = arith.constant 0 : index
    %209 = vector.load %arg2[%c3, %c0_43] : memref<24x256xf32, #tpu.memory_space<vmem>>, vector<1x2xf32>
    %c4 = arith.constant 4 : index
    %c0_44 = arith.constant 0 : index
    %210 = vector.load %arg2[%c4, %c0_44] : memref<24x256xf32, #tpu.memory_space<vmem>>, vector<2x2xf32>
    %211 = vector.extract_strided_slice %206 {offsets = [0, 0], sizes = [8, 2], strides = [1, 1]} : vector<64x128xf32> to vector<8x2xf32>
    %212 = vector.broadcast %208 : vector<1x2xf32> to vector<8x2xf32>
    %213 = arith.addf %212, %211 : vector<8x2xf32>
    %214 = vector.extract_strided_slice %213 {offsets = [0, 0], sizes = [8, 1], strides = [1, 1]} : vector<8x2xf32> to vector<8x1xf32>
    %215 = vector.extract_strided_slice %210 {offsets = [0, 0], sizes = [1, 2], strides = [1, 1]} : vector<2x2xf32> to vector<1x2xf32>
    %216 = vector.broadcast %214 : vector<8x1xf32> to vector<8x2xf32>
    %217 = vector.broadcast %215 : vector<1x2xf32> to vector<8x2xf32>
    %218 = arith.addf %216, %217 : vector<8x2xf32>
    %219 = vector.extract_strided_slice %213 {offsets = [0, 1], sizes = [8, 1], strides = [1, 1]} : vector<8x2xf32> to vector<8x1xf32>
    %220 = vector.extract_strided_slice %210 {offsets = [1, 0], sizes = [1, 2], strides = [1, 1]} : vector<2x2xf32> to vector<1x2xf32>
    %221 = vector.broadcast %219 : vector<8x1xf32> to vector<8x2xf32>
    %222 = vector.broadcast %220 : vector<1x2xf32> to vector<8x2xf32>
    %223 = arith.addf %221, %222 : vector<8x2xf32>
    %224 = arith.cmpf ogt, %223, %218 : vector<8x2xf32>
    %225 = arith.extui %224 : vector<8x2xi1> to vector<8x2xi32>
    %226 = arith.maximumf %218, %223 : vector<8x2xf32>
    %227 = vector.extract_strided_slice %206 {offsets = [8, 0], sizes = [8, 2], strides = [1, 1]} : vector<64x128xf32> to vector<8x2xf32>
    %228 = arith.addf %226, %227 : vector<8x2xf32>
    %229 = vector.extract_strided_slice %228 {offsets = [0, 0], sizes = [8, 1], strides = [1, 1]} : vector<8x2xf32> to vector<8x1xf32>
    %230 = vector.extract_strided_slice %210 {offsets = [0, 0], sizes = [1, 2], strides = [1, 1]} : vector<2x2xf32> to vector<1x2xf32>
    %231 = vector.broadcast %229 : vector<8x1xf32> to vector<8x2xf32>
    %232 = vector.broadcast %230 : vector<1x2xf32> to vector<8x2xf32>
    %233 = arith.addf %231, %232 : vector<8x2xf32>
    %234 = vector.extract_strided_slice %228 {offsets = [0, 1], sizes = [8, 1], strides = [1, 1]} : vector<8x2xf32> to vector<8x1xf32>
    %235 = vector.extract_strided_slice %210 {offsets = [1, 0], sizes = [1, 2], strides = [1, 1]} : vector<2x2xf32> to vector<1x2xf32>
    %236 = vector.broadcast %234 : vector<8x1xf32> to vector<8x2xf32>
    %237 = vector.broadcast %235 : vector<1x2xf32> to vector<8x2xf32>
    %238 = arith.addf %236, %237 : vector<8x2xf32>
    %239 = arith.cmpf ogt, %238, %233 : vector<8x2xf32>
    %240 = arith.extui %239 : vector<8x2xi1> to vector<8x2xi32>
    %241 = arith.maximumf %233, %238 : vector<8x2xf32>
    %242 = vector.extract_strided_slice %206 {offsets = [16, 0], sizes = [8, 2], strides = [1, 1]} : vector<64x128xf32> to vector<8x2xf32>
    %243 = arith.addf %241, %242 : vector<8x2xf32>
    %244 = vector.extract_strided_slice %243 {offsets = [0, 0], sizes = [8, 1], strides = [1, 1]} : vector<8x2xf32> to vector<8x1xf32>
    %245 = vector.extract_strided_slice %210 {offsets = [0, 0], sizes = [1, 2], strides = [1, 1]} : vector<2x2xf32> to vector<1x2xf32>
    %246 = vector.broadcast %244 : vector<8x1xf32> to vector<8x2xf32>
    %247 = vector.broadcast %245 : vector<1x2xf32> to vector<8x2xf32>
    %248 = arith.addf %246, %247 : vector<8x2xf32>
    %249 = vector.extract_strided_slice %243 {offsets = [0, 1], sizes = [8, 1], strides = [1, 1]} : vector<8x2xf32> to vector<8x1xf32>
    %250 = vector.extract_strided_slice %210 {offsets = [1, 0], sizes = [1, 2], strides = [1, 1]} : vector<2x2xf32> to vector<1x2xf32>
    %251 = vector.broadcast %249 : vector<8x1xf32> to vector<8x2xf32>
    %252 = vector.broadcast %250 : vector<1x2xf32> to vector<8x2xf32>
    %253 = arith.addf %251, %252 : vector<8x2xf32>
    %254 = arith.cmpf ogt, %253, %248 : vector<8x2xf32>
    %255 = arith.extui %254 : vector<8x2xi1> to vector<8x2xi32>
    %256 = arith.maximumf %248, %253 : vector<8x2xf32>
    %257 = vector.extract_strided_slice %206 {offsets = [24, 0], sizes = [8, 2], strides = [1, 1]} : vector<64x128xf32> to vector<8x2xf32>
    %258 = arith.addf %256, %257 : vector<8x2xf32>
    %259 = vector.extract_strided_slice %258 {offsets = [0, 0], sizes = [8, 1], strides = [1, 1]} : vector<8x2xf32> to vector<8x1xf32>
    %260 = vector.extract_strided_slice %210 {offsets = [0, 0], sizes = [1, 2], strides = [1, 1]} : vector<2x2xf32> to vector<1x2xf32>
    %261 = vector.broadcast %259 : vector<8x1xf32> to vector<8x2xf32>
    %262 = vector.broadcast %260 : vector<1x2xf32> to vector<8x2xf32>
    %263 = arith.addf %261, %262 : vector<8x2xf32>
    %264 = vector.extract_strided_slice %258 {offsets = [0, 1], sizes = [8, 1], strides = [1, 1]} : vector<8x2xf32> to vector<8x1xf32>
    %265 = vector.extract_strided_slice %210 {offsets = [1, 0], sizes = [1, 2], strides = [1, 1]} : vector<2x2xf32> to vector<1x2xf32>
    %266 = vector.broadcast %264 : vector<8x1xf32> to vector<8x2xf32>
    %267 = vector.broadcast %265 : vector<1x2xf32> to vector<8x2xf32>
    %268 = arith.addf %266, %267 : vector<8x2xf32>
    %269 = arith.cmpf ogt, %268, %263 : vector<8x2xf32>
    %270 = arith.extui %269 : vector<8x2xi1> to vector<8x2xi32>
    %271 = arith.maximumf %263, %268 : vector<8x2xf32>
    %272 = vector.extract_strided_slice %206 {offsets = [32, 0], sizes = [8, 2], strides = [1, 1]} : vector<64x128xf32> to vector<8x2xf32>
    %273 = arith.addf %271, %272 : vector<8x2xf32>
    %274 = vector.extract_strided_slice %273 {offsets = [0, 0], sizes = [8, 1], strides = [1, 1]} : vector<8x2xf32> to vector<8x1xf32>
    %275 = vector.extract_strided_slice %210 {offsets = [0, 0], sizes = [1, 2], strides = [1, 1]} : vector<2x2xf32> to vector<1x2xf32>
    %276 = vector.broadcast %274 : vector<8x1xf32> to vector<8x2xf32>
    %277 = vector.broadcast %275 : vector<1x2xf32> to vector<8x2xf32>
    %278 = arith.addf %276, %277 : vector<8x2xf32>
    %279 = vector.extract_strided_slice %273 {offsets = [0, 1], sizes = [8, 1], strides = [1, 1]} : vector<8x2xf32> to vector<8x1xf32>
    %280 = vector.extract_strided_slice %210 {offsets = [1, 0], sizes = [1, 2], strides = [1, 1]} : vector<2x2xf32> to vector<1x2xf32>
    %281 = vector.broadcast %279 : vector<8x1xf32> to vector<8x2xf32>
    %282 = vector.broadcast %280 : vector<1x2xf32> to vector<8x2xf32>
    %283 = arith.addf %281, %282 : vector<8x2xf32>
    %284 = arith.cmpf ogt, %283, %278 : vector<8x2xf32>
    %285 = arith.extui %284 : vector<8x2xi1> to vector<8x2xi32>
    %286 = arith.maximumf %278, %283 : vector<8x2xf32>
    %287 = vector.extract_strided_slice %206 {offsets = [40, 0], sizes = [8, 2], strides = [1, 1]} : vector<64x128xf32> to vector<8x2xf32>
    %288 = arith.addf %286, %287 : vector<8x2xf32>
    %289 = vector.extract_strided_slice %288 {offsets = [0, 0], sizes = [8, 1], strides = [1, 1]} : vector<8x2xf32> to vector<8x1xf32>
    %290 = vector.extract_strided_slice %210 {offsets = [0, 0], sizes = [1, 2], strides = [1, 1]} : vector<2x2xf32> to vector<1x2xf32>
    %291 = vector.broadcast %289 : vector<8x1xf32> to vector<8x2xf32>
    %292 = vector.broadcast %290 : vector<1x2xf32> to vector<8x2xf32>
    %293 = arith.addf %291, %292 : vector<8x2xf32>
    %294 = vector.extract_strided_slice %288 {offsets = [0, 1], sizes = [8, 1], strides = [1, 1]} : vector<8x2xf32> to vector<8x1xf32>
    %295 = vector.extract_strided_slice %210 {offsets = [1, 0], sizes = [1, 2], strides = [1, 1]} : vector<2x2xf32> to vector<1x2xf32>
    %296 = vector.broadcast %294 : vector<8x1xf32> to vector<8x2xf32>
    %297 = vector.broadcast %295 : vector<1x2xf32> to vector<8x2xf32>
    %298 = arith.addf %296, %297 : vector<8x2xf32>
    %299 = arith.cmpf ogt, %298, %293 : vector<8x2xf32>
    %300 = arith.extui %299 : vector<8x2xi1> to vector<8x2xi32>
    %301 = arith.maximumf %293, %298 : vector<8x2xf32>
    %302 = vector.extract_strided_slice %206 {offsets = [48, 0], sizes = [8, 2], strides = [1, 1]} : vector<64x128xf32> to vector<8x2xf32>
    %303 = arith.addf %301, %302 : vector<8x2xf32>
    %304 = vector.extract_strided_slice %303 {offsets = [0, 0], sizes = [8, 1], strides = [1, 1]} : vector<8x2xf32> to vector<8x1xf32>
    %305 = vector.extract_strided_slice %210 {offsets = [0, 0], sizes = [1, 2], strides = [1, 1]} : vector<2x2xf32> to vector<1x2xf32>
    %306 = vector.broadcast %304 : vector<8x1xf32> to vector<8x2xf32>
    %307 = vector.broadcast %305 : vector<1x2xf32> to vector<8x2xf32>
    %308 = arith.addf %306, %307 : vector<8x2xf32>
    %309 = vector.extract_strided_slice %303 {offsets = [0, 1], sizes = [8, 1], strides = [1, 1]} : vector<8x2xf32> to vector<8x1xf32>
    %310 = vector.extract_strided_slice %210 {offsets = [1, 0], sizes = [1, 2], strides = [1, 1]} : vector<2x2xf32> to vector<1x2xf32>
    %311 = vector.broadcast %309 : vector<8x1xf32> to vector<8x2xf32>
    %312 = vector.broadcast %310 : vector<1x2xf32> to vector<8x2xf32>
    %313 = arith.addf %311, %312 : vector<8x2xf32>
    %314 = arith.cmpf ogt, %313, %308 : vector<8x2xf32>
    %315 = arith.extui %314 : vector<8x2xi1> to vector<8x2xi32>
    %316 = arith.maximumf %308, %313 : vector<8x2xf32>
    %317 = vector.extract_strided_slice %206 {offsets = [56, 0], sizes = [8, 2], strides = [1, 1]} : vector<64x128xf32> to vector<8x2xf32>
    %318 = arith.addf %316, %317 : vector<8x2xf32>
    %319 = vector.broadcast %209 : vector<1x2xf32> to vector<8x2xf32>
    %320 = arith.addf %318, %319 : vector<8x2xf32>
    %321 = vector.extract_strided_slice %320 {offsets = [0, 1], sizes = [8, 1], strides = [1, 1]} : vector<8x2xf32> to vector<8x1xf32>
    %322 = vector.extract_strided_slice %320 {offsets = [0, 0], sizes = [8, 1], strides = [1, 1]} : vector<8x2xf32> to vector<8x1xf32>
    %323 = arith.cmpf ogt, %321, %322 : vector<8x1xf32>
    %324 = arith.extui %323 : vector<8x1xi1> to vector<8x1xi32>
    %325 = tpu.iota {dimensions = array<i32: 1>} : vector<8x128xi32>
    %c7_i32 = arith.constant 7 : i32
    %326 = vector.broadcast %c7_i32 : i32 to vector<8x128xi32>
    %327 = arith.cmpi eq, %325, %326 : vector<8x128xi32>
    %c0_i32 = arith.constant 0 : i32
    %328 = vector.shape_cast %324 : vector<8x1xi32> to vector<8x1xi32>
    %329 = vector.broadcast %328 : vector<8x1xi32> to vector<8x128xi32>
    %330 = vector.broadcast %c0_i32 : i32 to vector<8x128xi32>
    %331 = arith.select %327, %329, %330 : vector<8x128xi1>, vector<8x128xi32>
    %c1_i32 = arith.constant 1 : i32
    %332 = vector.broadcast %c1_i32 : i32 to vector<8x1xi32>
    %333 = arith.cmpi eq, %324, %332 : vector<8x1xi32>
    %334 = vector.extract_strided_slice %315 {offsets = [0, 1], sizes = [8, 1], strides = [1, 1]} : vector<8x2xi32> to vector<8x1xi32>
    %335 = vector.extract_strided_slice %315 {offsets = [0, 0], sizes = [8, 1], strides = [1, 1]} : vector<8x2xi32> to vector<8x1xi32>
    %336 = arith.select %333, %334, %335 : vector<8x1xi1>, vector<8x1xi32>
    %c6_i32 = arith.constant 6 : i32
    %337 = vector.broadcast %c6_i32 : i32 to vector<8x128xi32>
    %338 = arith.cmpi eq, %325, %337 : vector<8x128xi32>
    %339 = vector.shape_cast %336 : vector<8x1xi32> to vector<8x1xi32>
    %340 = vector.broadcast %339 : vector<8x1xi32> to vector<8x128xi32>
    %341 = arith.select %338, %340, %331 : vector<8x128xi1>, vector<8x128xi32>
    %c1_i32_45 = arith.constant 1 : i32
    %342 = vector.broadcast %c1_i32_45 : i32 to vector<8x1xi32>
    %343 = arith.cmpi eq, %336, %342 : vector<8x1xi32>
    %344 = vector.extract_strided_slice %300 {offsets = [0, 1], sizes = [8, 1], strides = [1, 1]} : vector<8x2xi32> to vector<8x1xi32>
    %345 = vector.extract_strided_slice %300 {offsets = [0, 0], sizes = [8, 1], strides = [1, 1]} : vector<8x2xi32> to vector<8x1xi32>
    %346 = arith.select %343, %344, %345 : vector<8x1xi1>, vector<8x1xi32>
    %c5_i32 = arith.constant 5 : i32
    %347 = vector.broadcast %c5_i32 : i32 to vector<8x128xi32>
    %348 = arith.cmpi eq, %325, %347 : vector<8x128xi32>
    %349 = vector.shape_cast %346 : vector<8x1xi32> to vector<8x1xi32>
    %350 = vector.broadcast %349 : vector<8x1xi32> to vector<8x128xi32>
    %351 = arith.select %348, %350, %341 : vector<8x128xi1>, vector<8x128xi32>
    %c1_i32_46 = arith.constant 1 : i32
    %352 = vector.broadcast %c1_i32_46 : i32 to vector<8x1xi32>
    %353 = arith.cmpi eq, %346, %352 : vector<8x1xi32>
    %354 = vector.extract_strided_slice %285 {offsets = [0, 1], sizes = [8, 1], strides = [1, 1]} : vector<8x2xi32> to vector<8x1xi32>
    %355 = vector.extract_strided_slice %285 {offsets = [0, 0], sizes = [8, 1], strides = [1, 1]} : vector<8x2xi32> to vector<8x1xi32>
    %356 = arith.select %353, %354, %355 : vector<8x1xi1>, vector<8x1xi32>
    %c4_i32 = arith.constant 4 : i32
    %357 = vector.broadcast %c4_i32 : i32 to vector<8x128xi32>
    %358 = arith.cmpi eq, %325, %357 : vector<8x128xi32>
    %359 = vector.shape_cast %356 : vector<8x1xi32> to vector<8x1xi32>
    %360 = vector.broadcast %359 : vector<8x1xi32> to vector<8x128xi32>
    %361 = arith.select %358, %360, %351 : vector<8x128xi1>, vector<8x128xi32>
    %c1_i32_47 = arith.constant 1 : i32
    %362 = vector.broadcast %c1_i32_47 : i32 to vector<8x1xi32>
    %363 = arith.cmpi eq, %356, %362 : vector<8x1xi32>
    %364 = vector.extract_strided_slice %270 {offsets = [0, 1], sizes = [8, 1], strides = [1, 1]} : vector<8x2xi32> to vector<8x1xi32>
    %365 = vector.extract_strided_slice %270 {offsets = [0, 0], sizes = [8, 1], strides = [1, 1]} : vector<8x2xi32> to vector<8x1xi32>
    %366 = arith.select %363, %364, %365 : vector<8x1xi1>, vector<8x1xi32>
    %c3_i32 = arith.constant 3 : i32
    %367 = vector.broadcast %c3_i32 : i32 to vector<8x128xi32>
    %368 = arith.cmpi eq, %325, %367 : vector<8x128xi32>
    %369 = vector.shape_cast %366 : vector<8x1xi32> to vector<8x1xi32>
    %370 = vector.broadcast %369 : vector<8x1xi32> to vector<8x128xi32>
    %371 = arith.select %368, %370, %361 : vector<8x128xi1>, vector<8x128xi32>
    %c1_i32_48 = arith.constant 1 : i32
    %372 = vector.broadcast %c1_i32_48 : i32 to vector<8x1xi32>
    %373 = arith.cmpi eq, %366, %372 : vector<8x1xi32>
    %374 = vector.extract_strided_slice %255 {offsets = [0, 1], sizes = [8, 1], strides = [1, 1]} : vector<8x2xi32> to vector<8x1xi32>
    %375 = vector.extract_strided_slice %255 {offsets = [0, 0], sizes = [8, 1], strides = [1, 1]} : vector<8x2xi32> to vector<8x1xi32>
    %376 = arith.select %373, %374, %375 : vector<8x1xi1>, vector<8x1xi32>
    %c2_i32 = arith.constant 2 : i32
    %377 = vector.broadcast %c2_i32 : i32 to vector<8x128xi32>
    %378 = arith.cmpi eq, %325, %377 : vector<8x128xi32>
    %379 = vector.shape_cast %376 : vector<8x1xi32> to vector<8x1xi32>
    %380 = vector.broadcast %379 : vector<8x1xi32> to vector<8x128xi32>
    %381 = arith.select %378, %380, %371 : vector<8x128xi1>, vector<8x128xi32>
    %c1_i32_49 = arith.constant 1 : i32
    %382 = vector.broadcast %c1_i32_49 : i32 to vector<8x1xi32>
    %383 = arith.cmpi eq, %376, %382 : vector<8x1xi32>
    %384 = vector.extract_strided_slice %240 {offsets = [0, 1], sizes = [8, 1], strides = [1, 1]} : vector<8x2xi32> to vector<8x1xi32>
    %385 = vector.extract_strided_slice %240 {offsets = [0, 0], sizes = [8, 1], strides = [1, 1]} : vector<8x2xi32> to vector<8x1xi32>
    %386 = arith.select %383, %384, %385 : vector<8x1xi1>, vector<8x1xi32>
    %c1_i32_50 = arith.constant 1 : i32
    %387 = vector.broadcast %c1_i32_50 : i32 to vector<8x128xi32>
    %388 = arith.cmpi eq, %325, %387 : vector<8x128xi32>
    %389 = vector.shape_cast %386 : vector<8x1xi32> to vector<8x1xi32>
    %390 = vector.broadcast %389 : vector<8x1xi32> to vector<8x128xi32>
    %391 = arith.select %388, %390, %381 : vector<8x128xi1>, vector<8x128xi32>
    %c1_i32_51 = arith.constant 1 : i32
    %392 = vector.broadcast %c1_i32_51 : i32 to vector<8x1xi32>
    %393 = arith.cmpi eq, %386, %392 : vector<8x1xi32>
    %394 = vector.extract_strided_slice %225 {offsets = [0, 1], sizes = [8, 1], strides = [1, 1]} : vector<8x2xi32> to vector<8x1xi32>
    %395 = vector.extract_strided_slice %225 {offsets = [0, 0], sizes = [8, 1], strides = [1, 1]} : vector<8x2xi32> to vector<8x1xi32>
    %396 = arith.select %393, %394, %395 : vector<8x1xi1>, vector<8x1xi32>
    %c0_i32_52 = arith.constant 0 : i32
    %397 = vector.broadcast %c0_i32_52 : i32 to vector<8x128xi32>
    %398 = arith.cmpi eq, %325, %397 : vector<8x128xi32>
    %399 = vector.shape_cast %396 : vector<8x1xi32> to vector<8x1xi32>
    %400 = vector.broadcast %399 : vector<8x1xi32> to vector<8x128xi32>
    %401 = arith.select %398, %400, %391 : vector<8x128xi1>, vector<8x128xi32>
    %c0_53 = arith.constant 0 : index
    %c0_54 = arith.constant 0 : index
    %402 = vector.load %arg4[%c0_53, %c0_54] : memref<8x128xi32, #tpu.memory_space<vmem>>, vector<8x128xi32>
    tpu.vector_store %arg4[%c0_53, %c0_54], %401 {strides = array<i32>} : memref<8x128xi32, #tpu.memory_space<vmem>>, vector<8x128xi32>,
    return
  }
}

</mosaic_0001>

<bundles_post_ra>
// kernel: bilstm_crf_forward.1
= control target key start
LH: loop header
LB: loop body
LE: loop exit
PB: predicated region body
PF: predicated region fallthrough
CT: control target
= control target key end

     0   :  { %10 = vsyncpa [#allocation4], 0  ;;  %s1550_s15 = smov [#allocation3]   ;;  %s2050_s0 = inlined_call_operand.vmem [shape: f32[64,32], index: 0, kind: input, shape index: {}]   ;;  %s2051_s1 = inlined_call_operand.hbm [shape: bf16[160,256], index: 1, kind: input, shape index: {}]   ;;  %s2052_s2 = inlined_call_operand.vmem [shape: f32[24,256], index: 2, kind: input, shape index: {}]   ;;  %s2053_s3 = inlined_call_operand.vmem [shape: f32[64,128], index: 3, kind: output, shape index: {0}]   ;;  %s2054_s4 = inlined_call_operand.vmem [shape: s32[8,128], index: 4, kind: output, shape index: {1}]  }
   0x1   :  { %s18_s16 = sshll.u32 %s1550_s15, 4  ;;  %s1526_s19 = scalar_lea.hbm %s2051_s1, 2560  ;;  %s19_s16 = int_to_ptr.vmem [resolvable:$true] %s18_s16 }
   0x2   :  { %p1527_p0 = scmp.ne.s32.totalorder %s2051_s1, %s1526_s19  ;;  %p1530_p1 = scmp.lt.u32.totalorder %s1526_s19, %s2051_s1 }
   0x4   :  { %p1532_p2 = pnand %p1530_p1, %p1527_p0 }
   0x6   :  { %1535 = shalt.err (!%p1532_p2)
}
   0x7   :  { %s1536_s24 = scalar_lea.vmem %s19_s16, 2560  ;;  %p1541_p4 = scmp.lt.s32.totalorder %s19_s16, %s19_s16 }
   0x8   :  { %p1537_p3 = scmp.ne.s32.totalorder %s19_s16, %s1536_s24  ;;  %p1542_p5 = scmp.lt.s32.totalorder %s1536_s24, %s1536_s24 }
   0xa   :  { %p1543_p6 = por %p1542_p5, %p1541_p4 }
   0xc   :  { %p1544_p7 = pnand %p1543_p6, %p1537_p3 }
   0xe   :  { %1547 = shalt.err (!%p1544_p7)
}
   0xf   :  { %s1551_s25 = smov 128   ;;  %s1552_s26 = smov 8  }
  0x10   :  { %24 = dma.hbm_to_vmem [thread:$0]  %s2051_s1, 2560, %s19_s16, [#allocation4], %s1551_s25, %s1551_s25, %s1552_s26  }
  0x11   :  { %1548 = dma.done.wait [#allocation4], 2560  }
  0x12   :  { %1549 = vsyncadd [#allocation4], 4294964736  ;;  %v1553_v0 = vmov 0   ;;  %v1602_v1 = vld [vmem:[%s2050_s0 + $0x30] sm:$0xff]  ;;  %v1607_v2 = vld [vmem:[%s2050_s0 + $0x38] sm:$0xff]  ;;  %s1554_s1 = smov 32   ;;  %v106_v35 = vlaneseq }
  0x13   :  { %338 = vmatprep.mubr.bf16.mxu1 %v1553_v0  ;;  %201 = vmatprep.mubr.bf16.mxu0 %v1553_v0  ;;  %v1371_v3 = vpack.i.bf16 %v1602_v1, %v1607_v2  ;;  %v1611_v4 = vld [vmem:[#allocation3 + $0x44] ss:$8 sps:$4 sm:$0xff]   ;;  %v1613_v6 = vld [vmem:[#allocation3 + $0x40] ss:$8 sps:$4 sm:$0xff]   ;;  %v1618_v8 = vld [vmem:[#allocation3 + $0x54] ss:$8 sps:$4 sm:$0xff]  }
  0x14   :  { %1391 = vset.pattern.permute.xlu1 %v1553_v0  ;;  %v1404_v5 = vld [vmem:[#allocation3 + $0x4] ss:$8 sps:$4 sm:$0xff]   ;;  %306 = vmatprep.subr.bf16.mxu1 %v1611_v4  ;;  %v1407_v7 = vld [vmem:[#allocation3] ss:$8 sps:$4 sm:$0xff]   ;;  %v1410_v9 = vld [vmem:[#allocation3 + $0x14] ss:$8 sps:$4 sm:$0xff]  }
  0x15   :  { %1372 = vrot.lane.b32.xlu0 %v1371_v3, %s1554_s1  ;;  %169 = vmatprep.subr.bf16.mxu0 %v1404_v5  ;;  %v1620_v10 = vld [vmem:[#allocation3 + $0x50] ss:$8 sps:$4 sm:$0xff]   ;;  %v1623_v12 = vld [vmem:[#allocation3 + $0x64] ss:$8 sps:$4 sm:$0xff]   ;;  %v1626_v14 = vld [vmem:[#allocation3 + $0x60] ss:$8 sps:$4 sm:$0xff]  }
  0x16   :  { %307 = vmatpush1.bf16.msra.mxu1 %v1613_v6  ;;  %170 = vmatpush1.bf16.msra.mxu0 %v1407_v7  ;;  %v1413_v11 = vld [vmem:[#allocation3 + $0x10] ss:$8 sps:$4 sm:$0xff]   ;;  %v1416_v13 = vld [vmem:[#allocation3 + $0x24] ss:$8 sps:$4 sm:$0xff]   ;;  %v1419_v15 = vld [vmem:[#allocation3 + $0x20] ss:$8 sps:$4 sm:$0xff]  }
  0x17   :  { %308 = vmatprep.subr.bf16.mxu1 %v1618_v8  ;;  %171 = vmatprep.subr.bf16.mxu0 %v1410_v9  ;;  %v1629_v16 = vld [vmem:[#allocation3 + $0x74] ss:$8 sps:$4 sm:$0xff]   ;;  %v1631_v18 = vld [vmem:[#allocation3 + $0x70] ss:$8 sps:$4 sm:$0xff]   ;;  %v259_v21 = vld [vmem:[%s2052_s2 + $0x20] sm:$0xff]  ;;  %s1555_s11 = smov 64  }
  0x18   :  { %v1422_v17 = vld [vmem:[#allocation3 + $0x34] ss:$8 sps:$4 sm:$0xff]   ;;  %v1425_v19 = vld [vmem:[#allocation3 + $0x30] ss:$8 sps:$4 sm:$0xff]   ;;  %363 = vrot.lane.b32.xlu1 %v259_v21, %s1555_s11  ;;  %vm156_vm0 = vcmask 523264   ;;  %vm71_vm1 = vcmask 261120  }
  0x19   :  { %v258_v20 = vld [vmem:[%s2052_s2 + $0x10] sm:$0xff]  ;;  %v1658_v24 = vld [vmem:[%s2050_s0] sm:$0xff]  ;;  %v1663_v25 = vld [vmem:[%s2050_s0 + $0x8] sm:$0xff]  ;;  %v1680_v36 = vshrl.u32 %v106_v35, 7  ;;  %s1556_s26 = smov 96  }
  0x1a   :  { %309 = vmatpush1.bf16.msra.mxu1 %v1620_v10  ;;  %172 = vmatpush1.bf16.msra.mxu0 %v1413_v11  ;;  %v262_v22 = vpack.c.bf16 %v258_v20, %v258_v20  ;;  %v100_v38 = vld [vmem:[%s2052_s2] ss:$8 sm:$0x3] }
  0x1b   :  { %310 = vmatprep.subr.bf16.mxu1 %v1623_v12  ;;  %173 = vmatprep.subr.bf16.mxu0 %v1416_v13  ;;  %v108_v37 = vsub.s32 0, %v1680_v36  ;;  %v112_v39 = vsub.s32 1, %v1680_v36 }
  0x1d   :  { %v1687_v40 = vrot.slane %v100_v38, %v108_v37  ;;  %v1689_v41 = vrot.slane %v100_v38, %v112_v39  ;;  %v1732_v38 = vld [vmem:[%s2050_s0 + $0x10] sm:$0xff]  ;;  %v1737_v39 = vld [vmem:[%s2050_s0 + $0x18] sm:$0xff] }
  0x1e   :  { %311 = vmatpush1.bf16.msra.mxu1 %v1626_v14  ;;  %174 = vmatpush1.bf16.msra.mxu0 %v1419_v15 }
  0x1f   :  { %312 = vmatprep.subr.bf16.mxu1 %v1629_v16  ;;  %175 = vmatprep.subr.bf16.mxu0 %v1422_v17 }
  0x22   :  { %313 = vmatpush1.bf16.msra.mxu1 %v1631_v18  ;;  %176 = vmatpush1.bf16.msra.mxu0 %v1425_v19 }
  0x23   :  { %389 = vmatprep.subr.bf16.mxu1 %v1611_v4  ;;  %468 = vmatprep.subr.bf16.mxu0 %v1611_v4 }
  0x25   :  { %1310 = vmatmul.mubr.msk.bf16.vlgmr.msra.gmra.mrb[0].mxu1 %vm156_vm0, %v262_v22 }
  0x26   :  { %390 = vmatpush1.bf16.msra.mxu1 %v1613_v6  ;;  %421 = vmatprep.mubr.bf16.mxu1 %v1553_v0 }
  0x27   :  { %391 = vmatprep.subr.bf16.mxu1 %v1618_v8 }
  0x2a   :  { %392 = vmatpush1.bf16.msra.mxu1 %v1620_v10 }
  0x2b   :  { %393 = vmatprep.subr.bf16.mxu1 %v1623_v12 }
  0x2e   :  { %394 = vmatpush1.bf16.msra.mxu1 %v1626_v14 }
  0x2f   :  { %395 = vmatprep.subr.bf16.mxu1 %v1629_v16 }
  0x32   :  { %396 = vmatpush1.bf16.msra.mxu1 %v1631_v18 }
  0x33   :  { %547 = vmatprep.subr.bf16.mxu1 %v1611_v4 }
  0x87   :  { %v1373_v23 = vpop.permute.xlu0 %1372 }
  0x88   :  { %v1375_v26 = vunpack.i.h.bf16 %v1373_v23  ;;  %v1374_v27 = vunpack.i.l.bf16 %v1373_v23 }
  0x8a   :  { %v72_v28 = vsel %vm71_vm1, %v1658_v24, %v1374_v27  ;;  %v73_v29 = vsel %vm71_vm1, %v1663_v25, %v1375_v26  ;;  %v364_v57 = vpop.permute.xlu1 %363  ;;  %v1715_v26 = vld [vmem:[%s2050_s0 + $0x20] sm:$0xff]  ;;  %v1720_v27 = vld [vmem:[%s2050_s0 + $0x28] sm:$0xff] }
  0x8b   :  { %v101_v30 = vpack.c.bf16 %v73_v29, %v72_v28  ;;  %v1376_v29 = vpack.i.bf16 %v1715_v26, %v1720_v27 }
  0x8d   :  { %1298 = vmatmul.mubr.msk.bf16.vlgmr.msra.gmra.mrb[0].mxu0 %vm156_vm0, %v101_v30 }
  0x8e   :  { %469 = vmatpush1.bf16.msra.mxu0 %v1613_v6  ;;  %211 = vmatprep.mubr.bf16.mxu0 %v1553_v0 }
  0x8f   :  { %470 = vmatprep.subr.bf16.mxu0 %v1618_v8 }
  0x92   :  { %471 = vmatpush1.bf16.msra.mxu0 %v1620_v10 }
  0x93   :  { %472 = vmatprep.subr.bf16.mxu0 %v1623_v12 }
  0x96   :  { %473 = vmatpush1.bf16.msra.mxu0 %v1626_v14 }
  0x97   :  { %474 = vmatprep.subr.bf16.mxu0 %v1629_v16 }
  0x9a   :  { %475 = vmatpush1.bf16.msra.mxu0 %v1631_v18 }
  0x9b   :  { %626 = vmatprep.subr.bf16.mxu0 %v1611_v4 }
  0xf8   :  { %v340_v31 = vpop.f32.mrb[0].mxu1 }
  0xf9   :  { %v342_v32 = vpop.f32.mrb[1].mxu1 }
  0xfa   :  { %v344_v33 = vpop.f32.mrb[2].mxu1 }
  0xfb   :  { %v345_v34 = vpop.f32.mrb[3].mxu1  ;;  %v1386_v33 = vpack.i.bf16 %v1658_v24, %v1663_v25 }
 0x160   :  { %v203_v42 = vpop.f32.mrb[0].mxu0 }
 0x161   :  { %v204_v43 = vadd.f32 %v203_v42, %v1687_v40  ;;  %v205_v44 = vpop.f32.mrb[1].mxu0 }
 0x162   :  { %v206_v45 = vadd.f32 %v205_v44, %v1689_v41  ;;  %v207_v46 = vpop.f32.mrb[2].mxu0 }
 0x163   :  { %v347_v47 = vadd.f32 %v340_v31, %v204_v43  ;;  %v209_v48 = vpop.f32.mrb[3].mxu0  ;;  %v208_v13 = vadd.f32 %v207_v46, %v1687_v40  ;;  %v1381_v43 = vpack.i.bf16 %v1732_v38, %v1737_v39 }
 0x164   :  { %v348_v49 = vadd.f32 %v342_v32, %v206_v45  ;;  %v210_v15 = vadd.f32 %v209_v48, %v1689_v41 }
 0x165   :  { %v1311_v51 = vmul.f32 -1.442695, %v347_v47 }
 0x166   :  { %1428 = vtanh.f32 %v348_v49  ;;  %v1312_v62 = vmul.f32 -1.442695, %v348_v49 }
 0x167   :  { %1430 = vpow2.f32 %v1311_v51 }
 0x170   :  { %v1429_v50 = vpop.eup %1428 }
 0x171   :  { %368 = vrot.lane.b32.xlu0 %v1429_v50, %s1555_s11  ;;  %v1431_v52 = vpop.eup %1430 }
 0x172   :  { %v355_v53 = vadd.f32 1.0, %v1431_v52 }
 0x174   :  { %1432 = vrcp.f32 %v355_v53 }
 0x17e   :  { %v1433_v54 = vpop.eup %1432 }
 0x17f   :  { %v366_v58 = vmul.f32 %v1433_v54, %v364_v57 }
 0x1e3   :  { %v369_v55 = vpop.permute.xlu0 %368 }
 0x1e4   :  { %v371_v56 = vmul.f32 %v1433_v54, %v369_v55 }
 0x1e6   :  { %373 = vrot.lane.b32.xlu1 %v371_v56, %s1555_s11 }
 0x258   :  { %v374_v59 = vpop.permute.xlu1 %373 }
 0x259   :  { %v376_v60 = vadd.f32 %v374_v59, %v366_v58 }
 0x25b   :  { %1434 = vtanh.f32 %v376_v60 }
 0x25c   :  { %1436 = vpow2.f32 %v1312_v62 }
 0x265   :  { %v1435_v61 = vpop.eup %1434 }
 0x266   :  { %379 = vrot.lane.b32.xlu0 %v1435_v61, %s1555_s11  ;;  %v1437_v63 = vpop.eup %1436 }
 0x267   :  { %v356_v3 = vadd.f32 1.0, %v1437_v63 }
 0x269   :  { %1438 = vrcp.f32 %v356_v3 }
 0x273   :  { %v1439_v5 = vpop.eup %1438 }
 0x2d8   :  { %v380_v7 = vpop.permute.xlu0 %379 }
 0x2d9   :  { %v1696_v9 = vmul.f32 %v1439_v5, %v380_v7 }
 0x2db   :  { %v385_v11 = vpack.c.bf16 %v1696_v9, %v1696_v9 }
 0x2dd   :  { %1313 = vmatmul.mubr.msk.bf16.vlgmr.msra.gmra.mrb[4].mxu1 %vm156_vm0, %v385_v11 }
 0x2de   :  { %548 = vmatpush1.bf16.msra.mxu1 %v1613_v6  ;;  %579 = vmatprep.mubr.bf16.mxu1 %v1553_v0 }
 0x2df   :  { %549 = vmatprep.subr.bf16.mxu1 %v1618_v8 }
 0x2e2   :  { %550 = vmatpush1.bf16.msra.mxu1 %v1620_v10 }
 0x2e3   :  { %551 = vmatprep.subr.bf16.mxu1 %v1623_v12 }
 0x2e6   :  { %552 = vmatpush1.bf16.msra.mxu1 %v1626_v14 }
 0x2e7   :  { %553 = vmatprep.subr.bf16.mxu1 %v1629_v16 }
 0x2ea   :  { %554 = vmatpush1.bf16.msra.mxu1 %v1631_v18 }
 0x2eb   :  { %705 = vmatprep.subr.bf16.mxu1 %v1611_v4 }
 0x3b0   :  { %v423_v17 = vpop.f32.mrb[4].mxu1 }
 0x3b1   :  { %v430_v19 = vadd.f32 %v423_v17, %v208_v13  ;;  %v425_v20 = vpop.f32.mrb[5].mxu1 }
 0x3b2   :  { %v431_v21 = vadd.f32 %v425_v20, %v210_v15  ;;  %v427_v22 = vpop.f32.mrb[6].mxu1 }
 0x3b3   :  { %v428_v23 = vpop.f32.mrb[7].mxu1  ;;  %v1314_v30 = vmul.f32 -1.442695, %v430_v19 }
 0x3b4   :  { %1440 = vtanh.f32 %v431_v21  ;;  %v1315_v7 = vmul.f32 -1.442695, %v431_v21 }
 0x3b5   :  { %1442 = vpow2.f32 %v1314_v30 }
 0x3be   :  { %v1441_v28 = vpop.eup %1440 }
 0x3bf   :  { %447 = vrot.lane.b32.xlu1 %v1441_v28, %s1555_s11  ;;  %v1443_v31 = vpop.eup %1442 }
 0x3c0   :  { %v438_v32 = vadd.f32 1.0, %v1443_v31 }
 0x3c2   :  { %1444 = vrcp.f32 %v438_v32 }
 0x3c3   :  { %1377 = vrot.lane.b32.xlu1 %v1376_v29, %s1554_s1 }
 0x3c7   :  { %1387 = vrot.lane.b32.xlu1 %v1386_v33, %s1554_s1 }
 0x3cc   :  { %v1445_v34 = vpop.eup %1444 }
 0x3cd   :  { %v445_v50 = vmul.f32 %v1445_v34, %v376_v60 }
 0x431   :  { %v448_v37 = vpop.permute.xlu1 %447 }
 0x432   :  { %v450_v42 = vmul.f32 %v1445_v34, %v448_v37 }
 0x434   :  { %452 = vrot.lane.b32.xlu0 %v450_v42, %s1555_s11 }
 0x435   :  { %v1378_v44 = vpop.permute.xlu1 %1377 }
 0x436   :  { %v1380_v45 = vunpack.i.h.bf16 %v1378_v44  ;;  %v1379_v46 = vunpack.i.l.bf16 %v1378_v44 }
 0x438   :  { %1382 = vrot.lane.b32.xlu0 %v1381_v43, %s1554_s1  ;;  %v75_v47 = vsel %vm71_vm1, %v1737_v39, %v1380_v45  ;;  %v74_v48 = vsel %vm71_vm1, %v1732_v38, %v1379_v46 }
 0x439   :  { %v102_v49 = vpack.c.bf16 %v75_v47, %v74_v48  ;;  %v1388_v54 = vpop.permute.xlu1 %1387 }
 0x43a   :  { %v1390_v59 = vunpack.i.h.bf16 %v1388_v54  ;;  %v1389_v61 = vunpack.i.l.bf16 %v1388_v54 }
 0x43b   :  { %1299 = vmatmul.mubr.msk.bf16.gmra.mrb[4].mxu0 %vm156_vm0, %v102_v49 }
 0x43c   :  { %221 = vmatprep.mubr.bf16.mxu0 %v1553_v0  ;;  %v79_v60 = vsel %vm71_vm1, %v1607_v2, %v1390_v59  ;;  %v78_v63 = vsel %vm71_vm1, %v1602_v1, %v1389_v61 }
 0x43d   :  { %v104_v5 = vpack.c.bf16 %v79_v60, %v78_v63 }
 0x4a6   :  { %v453_v51 = vpop.permute.xlu0 %452 }
 0x4a7   :  { %v1749_v52 = vadd.f32 %v453_v51, %v445_v50 }
 0x4a9   :  { %1446 = vtanh.f32 %v1749_v52 }
 0x4aa   :  { %v1383_v53 = vpop.permute.xlu0 %1382  ;;  %1448 = vpow2.f32 %v1315_v7 }
 0x4ab   :  { %v1385_v55 = vunpack.i.h.bf16 %v1383_v53  ;;  %v1384_v56 = vunpack.i.l.bf16 %v1383_v53 }
 0x4ad   :  { %v77_v57 = vsel %vm71_vm1, %v1720_v27, %v1385_v55  ;;  %v76_v58 = vsel %vm71_vm1, %v1715_v26, %v1384_v56 }
 0x4ae   :  { %v103_v62 = vpack.c.bf16 %v77_v57, %v76_v58 }
 0x4b0   :  { %1300 = vmatmul.mubr.msk.bf16.gmra.mrb[8].mxu0 %vm156_vm0, %v103_v62 }
 0x4b1   :  { %231 = vmatprep.mubr.bf16.mxu0 %v1553_v0 }
 0x4b3   :  { %v1447_v3 = vpop.eup %1446 }
 0x4b4   :  { %458 = vrot.lane.b32.xlu0 %v1447_v3, %s1555_s11  ;;  %v1449_v17 = vpop.eup %1448 }
 0x4b5   :  { %v439_v1 = vadd.f32 1.0, %v1449_v17 }
 0x4b7   :  { %1450 = vrcp.f32 %v439_v1 }
 0x4b8   :  { %1301 = vmatmul.mubr.msk.bf16.gmra.mrb[12].mxu0 %vm156_vm0, %v104_v5 }
 0x4b9   :  { %500 = vmatprep.mubr.bf16.mxu0 %v1553_v0 }
 0x4c1   :  { %v1451_v19 = vpop.eup %1450 }
 0x50e   :  { %v213_v11 = vpop.f32.mrb[4].mxu0 }
 0x50f   :  { %v215_v13 = vpop.f32.mrb[5].mxu0  ;;  %v214_v37 = vadd.f32 %v213_v11, %v1687_v40 }
 0x510   :  { %v1765_v15 = vpop.f32.mrb[6].mxu0  ;;  %v216_v42 = vadd.f32 %v215_v13, %v1689_v41 }
 0x511   :  { %v1767_v2 = vpop.f32.mrb[7].mxu0 }
 0x512   :  { %v220_v13 = vadd.f32 %v1767_v2, %v1689_v41 }
 0x526   :  { %v459_v20 = vpop.permute.xlu0 %458 }
 0x527   :  { %v1769_v22 = vmul.f32 %v1451_v19, %v459_v20 }
 0x529   :  { %v464_v23 = vpack.c.bf16 %v1769_v22, %v1769_v22 }
 0x52b   :  { %1316 = vmatmul.mubr.msk.bf16.vlgmr.msra.gmra.mrb[16].mxu0 %vm156_vm0, %v464_v23 }
 0x52c   :  { %627 = vmatpush1.bf16.msra.mxu0 %v1613_v6  ;;  %658 = vmatprep.mubr.bf16.mxu0 %v1553_v0 }
 0x52d   :  { %628 = vmatprep.subr.bf16.mxu0 %v1618_v8 }
 0x530   :  { %629 = vmatpush1.bf16.msra.mxu0 %v1620_v10 }
 0x531   :  { %630 = vmatprep.subr.bf16.mxu0 %v1623_v12 }
 0x534   :  { %631 = vmatpush1.bf16.msra.mxu0 %v1626_v14 }
 0x535   :  { %632 = vmatprep.subr.bf16.mxu0 %v1629_v16 }
 0x538   :  { %633 = vmatpush1.bf16.msra.mxu0 %v1631_v18 }
 0x539   :  { %784 = vmatprep.subr.bf16.mxu0 %v1611_v4 }
 0x583   :  { %v1783_v21 = vpop.f32.mrb[8].mxu0 }
 0x584   :  { %v1785_v28 = vpop.f32.mrb[9].mxu0 }
 0x585   :  { %v1787_v29 = vpop.f32.mrb[10].mxu0 }
 0x586   :  { %v1789_v30 = vpop.f32.mrb[11].mxu0 }
 0x58b   :  { %v1791_v31 = vpop.f32.mrb[12].mxu0 }
 0x58c   :  { %v1793_v32 = vpop.f32.mrb[13].mxu0 }
 0x58d   :  { %v1795_v33 = vpop.f32.mrb[14].mxu0 }
 0x58e   :  { %v1797_v34 = vpop.f32.mrb[15].mxu0 }
 0x5fe   :  { %v502_v43 = vpop.f32.mrb[16].mxu0 }
 0x5ff   :  { %v509_v44 = vadd.f32 %v502_v43, %v214_v37  ;;  %v504_v45 = vpop.f32.mrb[17].mxu0 }
 0x600   :  { %v510_v46 = vadd.f32 %v504_v45, %v216_v42  ;;  %v506_v47 = vpop.f32.mrb[18].mxu0 }
 0x601   :  { %v507_v48 = vpop.f32.mrb[19].mxu0  ;;  %v1317_v50 = vmul.f32 -1.442695, %v509_v44 }
 0x602   :  { %1452 = vtanh.f32 %v510_v46  ;;  %v1318_v62 = vmul.f32 -1.442695, %v510_v46 }
 0x603   :  { %1454 = vpow2.f32 %v1317_v50 }
 0x60c   :  { %v1453_v49 = vpop.eup %1452 }
 0x60d   :  { %526 = vrot.lane.b32.xlu1 %v1453_v49, %s1555_s11  ;;  %v1455_v51 = vpop.eup %1454 }
 0x60e   :  { %v517_v53 = vadd.f32 1.0, %v1455_v51 }
 0x610   :  { %1456 = vrcp.f32 %v517_v53 }
 0x61a   :  { %v1457_v54 = vpop.eup %1456 }
 0x61b   :  { %v524_v57 = vmul.f32 %v1457_v54, %v1749_v52  ;;  %v218_v52 = vadd.f32 %v1765_v15, %v1687_v40 }
 0x67f   :  { %v527_v55 = vpop.permute.xlu1 %526 }
 0x680   :  { %v529_v56 = vmul.f32 %v1457_v54, %v527_v55 }
 0x682   :  { %531 = vrot.lane.b32.xlu0 %v529_v56, %s1555_s11 }
 0x6f4   :  { %v532_v58 = vpop.permute.xlu0 %531 }
 0x6f5   :  { %v534_v59 = vadd.f32 %v532_v58, %v524_v57  ;;  %v224_v58 = vadd.f32 %v1783_v21, %v1687_v40 }
 0x6f7   :  { %1458 = vtanh.f32 %v534_v59 }
 0x6f8   :  { %1460 = vpow2.f32 %v1318_v62 }
 0x701   :  { %v1459_v61 = vpop.eup %1458 }
 0x702   :  { %537 = vrot.lane.b32.xlu1 %v1459_v61, %s1555_s11  ;;  %v1461_v60 = vpop.eup %1460 }
 0x703   :  { %v518_v63 = vadd.f32 1.0, %v1461_v60 }
 0x705   :  { %1462 = vrcp.f32 %v518_v63 }
 0x70f   :  { %v1463_v3 = vpop.eup %1462 }
 0x774   :  { %v538_v5 = vpop.permute.xlu1 %537 }
 0x775   :  { %v1805_v7 = vmul.f32 %v1463_v3, %v538_v5 }
 0x777   :  { %v543_v11 = vpack.c.bf16 %v1805_v7, %v1805_v7 }
 0x779   :  { %1319 = vmatmul.mubr.msk.bf16.vlgmr.msra.gmra.mrb[8].mxu1 %vm156_vm0, %v543_v11 }
 0x77a   :  { %706 = vmatpush1.bf16.msra.mxu1 %v1613_v6  ;;  %737 = vmatprep.mubr.bf16.mxu1 %v1553_v0 }
 0x77b   :  { %707 = vmatprep.subr.bf16.mxu1 %v1618_v8 }
 0x77e   :  { %708 = vmatpush1.bf16.msra.mxu1 %v1620_v10 }
 0x77f   :  { %709 = vmatprep.subr.bf16.mxu1 %v1623_v12 }
 0x782   :  { %710 = vmatpush1.bf16.msra.mxu1 %v1626_v14 }
 0x783   :  { %711 = vmatprep.subr.bf16.mxu1 %v1629_v16 }
 0x786   :  { %712 = vmatpush1.bf16.msra.mxu1 %v1631_v18 }
 0x787   :  { %863 = vmatprep.subr.bf16.mxu1 %v1611_v4 }
 0x84c   :  { %v581_v17 = vpop.f32.mrb[8].mxu1 }
 0x84d   :  { %v588_v1 = vadd.f32 %v581_v17, %v218_v52  ;;  %v583_v19 = vpop.f32.mrb[9].mxu1 }
 0x84e   :  { %v589_v20 = vadd.f32 %v583_v19, %v220_v13  ;;  %v585_v23 = vpop.f32.mrb[10].mxu1 }
 0x84f   :  { %v586_v37 = vpop.f32.mrb[11].mxu1  ;;  %v1320_v43 = vmul.f32 -1.442695, %v588_v1 }
 0x850   :  { %1464 = vtanh.f32 %v589_v20  ;;  %v1321_v50 = vmul.f32 -1.442695, %v589_v20 }
 0x851   :  { %1466 = vpow2.f32 %v1320_v43 }
 0x85a   :  { %v1465_v42 = vpop.eup %1464 }
 0x85b   :  { %605 = vrot.lane.b32.xlu0 %v1465_v42, %s1555_s11  ;;  %v1467_v44 = vpop.eup %1466 }
 0x85c   :  { %v596_v4 = vadd.f32 1.0, %v1467_v44 }
 0x85e   :  { %1468 = vrcp.f32 %v596_v4 }
 0x868   :  { %v1469_v45 = vpop.eup %1468 }
 0x869   :  { %v603_v2 = vmul.f32 %v1469_v45, %v534_v59  ;;  %v226_v59 = vadd.f32 %v1785_v28, %v1689_v41 }
 0x8cd   :  { %v606_v15 = vpop.permute.xlu0 %605 }
 0x8ce   :  { %v608_v46 = vmul.f32 %v1469_v45, %v606_v15 }
 0x8d0   :  { %610 = vrot.lane.b32.xlu1 %v608_v46, %s1555_s11 }
 0x942   :  { %v611_v47 = vpop.permute.xlu1 %610 }
 0x943   :  { %v613_v48 = vadd.f32 %v611_v47, %v603_v2  ;;  %v228_v2 = vadd.f32 %v1787_v29, %v1687_v40 }
 0x945   :  { %1470 = vtanh.f32 %v613_v48 }
 0x946   :  { %1472 = vpow2.f32 %v1321_v50 }
 0x94f   :  { %v1471_v49 = vpop.eup %1470 }
 0x950   :  { %616 = vrot.lane.b32.xlu0 %v1471_v49, %s1555_s11  ;;  %v1473_v51 = vpop.eup %1472 }
 0x951   :  { %v597_v53 = vadd.f32 1.0, %v1473_v51 }
 0x953   :  { %1474 = vrcp.f32 %v597_v53 }
 0x95d   :  { %v1475_v54 = vpop.eup %1474 }
 0x9c2   :  { %v617_v55 = vpop.permute.xlu0 %616 }
 0x9c3   :  { %v1826_v56 = vmul.f32 %v1475_v54, %v617_v55 }
 0x9c5   :  { %v622_v57 = vpack.c.bf16 %v1826_v56, %v1826_v56 }
 0x9c7   :  { %1322 = vmatmul.mubr.msk.bf16.vlgmr.msra.gmra.mrb[20].mxu0 %vm156_vm0, %v622_v57 }
 0x9c8   :  { %785 = vmatpush1.bf16.msra.mxu0 %v1613_v6  ;;  %816 = vmatprep.mubr.bf16.mxu0 %v1553_v0 }
 0x9c9   :  { %786 = vmatprep.subr.bf16.mxu0 %v1618_v8 }
 0x9cc   :  { %787 = vmatpush1.bf16.msra.mxu0 %v1620_v10 }
 0x9cd   :  { %788 = vmatprep.subr.bf16.mxu0 %v1623_v12 }
 0x9d0   :  { %789 = vmatpush1.bf16.msra.mxu0 %v1626_v14 }
 0x9d1   :  { %790 = vmatprep.subr.bf16.mxu0 %v1629_v16 }
 0x9d4   :  { %791 = vmatpush1.bf16.msra.mxu0 %v1631_v18 }
 0xa9a   :  { %v660_v61 = vpop.f32.mrb[20].mxu0 }
 0xa9b   :  { %v667_v62 = vadd.f32 %v660_v61, %v224_v58  ;;  %v662_v60 = vpop.f32.mrb[21].mxu0 }
 0xa9c   :  { %v668_v63 = vadd.f32 %v662_v60, %v226_v59  ;;  %v664_v3 = vpop.f32.mrb[22].mxu0 }
 0xa9d   :  { %v665_v5 = vpop.f32.mrb[23].mxu0  ;;  %v1323_v52 = vmul.f32 -1.442695, %v667_v62 }
 0xa9e   :  { %1476 = vtanh.f32 %v668_v63  ;;  %v1324_v42 = vmul.f32 -1.442695, %v668_v63  ;;  %v234_v5 = vadd.f32 %v1791_v31, %v1687_v40 }
 0xa9f   :  { %1478 = vpow2.f32 %v1323_v52 }
 0xaa8   :  { %v1477_v11 = vpop.eup %1476 }
 0xaa9   :  { %684 = vrot.lane.b32.xlu1 %v1477_v11, %s1555_s11  ;;  %v1479_v13 = vpop.eup %1478  ;;  %v236_v11 = vadd.f32 %v1793_v32, %v1689_v41 }
 0xaaa   :  { %v675_v17 = vadd.f32 1.0, %v1479_v13 }
 0xaac   :  { %1480 = vrcp.f32 %v675_v17 }
 0xab6   :  { %v1481_v1 = vpop.eup %1480 }
 0xab7   :  { %v682_v28 = vmul.f32 %v1481_v1, %v613_v48 }
 0xb1b   :  { %v685_v21 = vpop.permute.xlu1 %684 }
 0xb1c   :  { %v687_v19 = vmul.f32 %v1481_v1, %v685_v21 }
 0xb1e   :  { %689 = vrot.lane.b32.xlu0 %v687_v19, %s1555_s11 }
 0xb90   :  { %v690_v20 = vpop.permute.xlu0 %689 }
 0xb91   :  { %v692_v23 = vadd.f32 %v690_v20, %v682_v28 }
 0xb93   :  { %1482 = vtanh.f32 %v692_v23 }
 0xb94   :  { %1484 = vpow2.f32 %v1324_v42 }
 0xb9d   :  { %v1483_v37 = vpop.eup %1482 }
 0xb9e   :  { %695 = vrot.lane.b32.xlu1 %v1483_v37, %s1555_s11  ;;  %v1485_v43 = vpop.eup %1484 }
 0xb9f   :  { %v676_v44 = vadd.f32 1.0, %v1485_v43 }
 0xba1   :  { %1486 = vrcp.f32 %v676_v44 }
 0xbab   :  { %v1487_v4 = vpop.eup %1486 }
 0xc10   :  { %v696_v45 = vpop.permute.xlu1 %695 }
 0xc11   :  { %v1846_v15 = vmul.f32 %v1487_v4, %v696_v45 }
 0xc13   :  { %v701_v46 = vpack.c.bf16 %v1846_v15, %v1846_v15 }
 0xc15   :  { %1325 = vmatmul.mubr.msk.bf16.vlgmr.msra.gmra.mrb[12].mxu1 %vm156_vm0, %v701_v46 }
 0xc16   :  { %864 = vmatpush1.bf16.msra.mxu1 %v1613_v6  ;;  %895 = vmatprep.mubr.bf16.mxu1 %v1553_v0  ;;  %v230_v6 = vadd.f32 %v1789_v30, %v1689_v41 }
 0xc17   :  { %865 = vmatprep.subr.bf16.mxu1 %v1618_v8 }
 0xc1a   :  { %866 = vmatpush1.bf16.msra.mxu1 %v1620_v10 }
 0xc1b   :  { %867 = vmatprep.subr.bf16.mxu1 %v1623_v12 }
 0xc1e   :  { %868 = vmatpush1.bf16.msra.mxu1 %v1626_v14 }
 0xc1f   :  { %869 = vmatprep.subr.bf16.mxu1 %v1629_v16 }
 0xc22   :  { %870 = vmatpush1.bf16.msra.mxu1 %v1631_v18 }
 0xce8   :  { %v739_v47 = vpop.f32.mrb[12].mxu1 }
 0xce9   :  { %v746_v48 = vadd.f32 %v739_v47, %v228_v2  ;;  %v741_v49 = vpop.f32.mrb[13].mxu1 }
 0xcea   :  { %v747_v8 = vadd.f32 %v741_v49, %v230_v6  ;;  %v743_v50 = vpop.f32.mrb[14].mxu1 }
 0xceb   :  { %v744_v10 = vpop.f32.mrb[15].mxu1  ;;  %v1326_v14 = vmul.f32 -1.442695, %v746_v48  ;;  %v238_v50 = vadd.f32 %v1795_v33, %v1687_v40 }
 0xcec   :  { %1488 = vtanh.f32 %v747_v8  ;;  %v1327_v58 = vmul.f32 -1.442695, %v747_v8  ;;  %v240_v10 = vadd.f32 %v1797_v34, %v1689_v41 }
 0xced   :  { %1490 = vpow2.f32 %v1326_v14 }
 0xcf6   :  { %v1489_v12 = vpop.eup %1488 }
 0xcf7   :  { %763 = vrot.lane.b32.xlu0 %v1489_v12, %s1555_s11  ;;  %v1491_v16 = vpop.eup %1490 }
 0xcf8   :  { %v754_v18 = vadd.f32 1.0, %v1491_v16 }
 0xcfa   :  { %1492 = vrcp.f32 %v754_v18 }
 0xd04   :  { %v1493_v51 = vpop.eup %1492 }
 0xd05   :  { %v761_v30 = vmul.f32 %v1493_v51, %v692_v23 }
 0xd69   :  { %v764_v29 = vpop.permute.xlu0 %763 }
 0xd6a   :  { %v766_v53 = vmul.f32 %v1493_v51, %v764_v29 }
 0xd6c   :  { %768 = vrot.lane.b32.xlu1 %v766_v53, %s1555_s11 }
 0xdde   :  { %v769_v54 = vpop.permute.xlu1 %768 }
 0xddf   :  { %v771_v55 = vadd.f32 %v769_v54, %v761_v30 }
 0xde1   :  { %1494 = vtanh.f32 %v771_v55 }
 0xde2   :  { %1496 = vpow2.f32 %v1327_v58 }
 0xdeb   :  { %v1495_v57 = vpop.eup %1494 }
 0xdec   :  { %774 = vrot.lane.b32.xlu0 %v1495_v57, %s1555_s11  ;;  %v1497_v59 = vpop.eup %1496 }
 0xded   :  { %v755_v61 = vadd.f32 1.0, %v1497_v59  ;;  %v1426_v59 = vld [vmem:[#allocation3 + $0x80] ss:$8 sps:$4 sm:$0xff]  }
 0xdee   :  { %1346 = vmatprep.subr.bf16.mxu0 %v1426_v59  ;;  %1358 = vmatprep.subr.bf16.mxu1 %v1426_v59 }
 0xdef   :  { %1498 = vrcp.f32 %v755_v61 }
 0xdf9   :  { %v1499_v62 = vpop.eup %1498 }
 0xe5e   :  { %v775_v60 = vpop.permute.xlu0 %774 }
 0xe5f   :  { %v1866_v63 = vmul.f32 %v1499_v62, %v775_v60 }
 0xe61   :  { %v780_v3 = vpack.c.bf16 %v1866_v63, %v1866_v63 }
 0xe63   :  { %1328 = vmatmul.mubr.msk.bf16.vlgmr.msra.gmra.mrb[24].mxu0 %vm156_vm0, %v780_v3 }
 0xe64   :  { %1347 = vmatpush3.bf16.msra.mxu0 %v1426_v59 }
 0xf36   :  { %v818_v52 = vpop.f32.mrb[24].mxu0 }
 0xf37   :  { %v825_v13 = vadd.f32 %v818_v52, %v234_v5  ;;  %v820_v17 = vpop.f32.mrb[25].mxu0  ;;  %v1427_v5 = vld [vmem:[#allocation3 + $0x90] ss:$8 sps:$4 sm:$0xff]  }
 0xf38   :  { %v826_v1 = vadd.f32 %v820_v17, %v236_v11  ;;  %v822_v21 = vpop.f32.mrb[26].mxu0  ;;  %1348 = vmatprep.subr.bf16.mxu0 %v1427_v5 }
 0xf39   :  { %v823_v19 = vpop.f32.mrb[27].mxu0  ;;  %v1329_v20 = vmul.f32 -1.442695, %v825_v13  ;;  %1349 = vmatpush3.bf16.msra.mxu0 %v1427_v5  ;;  %v936_v21 = vadd.f32 %v1696_v9, %v1658_v24  ;;  %v1557_v24 = vmov 1  }
 0xf3a   :  { %1500 = vtanh.f32 %v826_v1  ;;  %v1330_v46 = vmul.f32 -1.442695, %v826_v1  ;;  %v937_v1 = vadd.f32 %v1769_v22, %v1663_v25  ;;  %1392 = vset.pattern.permute.xlu0 %v1557_v24 }
 0xf3b   :  { %1502 = vpow2.f32 %v1329_v20 }
 0xf44   :  { %v1501_v28 = vpop.eup %1500 }
 0xf45   :  { %842 = vrot.lane.b32.xlu1 %v1501_v28, %s1555_s11  ;;  %v1503_v23 = vpop.eup %1502 }
 0xf46   :  { %v833_v37 = vadd.f32 1.0, %v1503_v23 }
 0xf48   :  { %1504 = vrcp.f32 %v833_v37  ;;  %v939_v37 = vadd.f32 %v1826_v56, %v1737_v39 }
 0xf52   :  { %v1505_v42 = vpop.eup %1504 }
 0xf53   :  { %v840_v32 = vmul.f32 %v1505_v42, %v771_v55 }
 0xfb7   :  { %v843_v31 = vpop.permute.xlu1 %842 }
 0xfb8   :  { %v845_v43 = vmul.f32 %v1505_v42, %v843_v31  ;;  %v938_v31 = vadd.f32 %v1805_v7, %v1732_v38 }
 0xfba   :  { %847 = vrot.lane.b32.xlu0 %v845_v43, %s1555_s11 }
0x102c   :  { %v848_v44 = vpop.permute.xlu0 %847 }
0x102d   :  { %v850_v4 = vadd.f32 %v848_v44, %v840_v32 }
0x102f   :  { %1506 = vtanh.f32 %v850_v4 }
0x1030   :  { %1508 = vpow2.f32 %v1330_v46 }
0x1039   :  { %v1507_v45 = vpop.eup %1506 }
0x103a   :  { %853 = vrot.lane.b32.xlu1 %v1507_v45, %s1555_s11  ;;  %v1509_v2 = vpop.eup %1508  ;;  %v1086_v45 = vld [vmem:[%s2052_s2 + $0x2] ss:$0 sm:$0xff] }
0x103b   :  { %v834_v6 = vadd.f32 1.0, %v1509_v2 }
0x103d   :  { %1510 = vrcp.f32 %v834_v6 }
0x1047   :  { %v1511_v47 = vpop.eup %1510 }
0x10ac   :  { %v854_v48 = vpop.permute.xlu1 %853 }
0x10ad   :  { %v1878_v49 = vmul.f32 %v1511_v47, %v854_v48 }
0x10af   :  { %v859_v8 = vpack.c.bf16 %v1878_v49, %v1878_v49 }
0x10b1   :  { %1331 = vmatmul.mubr.msk.bf16.vlgmr.msra.gmra.mrb[16].mxu1 %vm156_vm0, %v859_v8 }
0x10b2   :  { %1360 = vmatpush3.bf16.msra.mxu1 %v1426_v59 }
0x10b3   :  { %1359 = vmatprep.subr.bf16.mxu1 %v1427_v5 }
0x10b6   :  { %1361 = vmatpush3.bf16.msra.mxu1 %v1427_v5 }
0x1184   :  { %v897_v12 = vpop.f32.mrb[16].mxu1 }
0x1185   :  { %v904_v14 = vadd.f32 %v897_v12, %v238_v50  ;;  %v899_v16 = vpop.f32.mrb[17].mxu1  ;;  %v1106_v50 = vsub.s32 5, %v1680_v36  ;;  %v1088_v12 = vld [vmem:[%s2052_s2] sm:$0x30] }
0x1186   :  { %v905_v18 = vadd.f32 %v899_v16, %v240_v10  ;;  %v901_v51 = vpop.f32.mrb[18].mxu1  ;;  %v1097_v10 = vsub.s32 4, %v1680_v36  ;;  %v940_v36 = vadd.f32 %v1846_v15, %v1715_v26 }
0x1187   :  { %v902_v29 = vpop.f32.mrb[19].mxu1  ;;  %v1332_v30 = vmul.f32 -1.442695, %v904_v14 }
0x1188   :  { %1512 = vtanh.f32 %v905_v18  ;;  %v1333_v62 = vmul.f32 -1.442695, %v905_v18  ;;  %v1955_v16 = vrot.slane %v1088_v12, %v1097_v10 }
0x1189   :  { %1514 = vpow2.f32 %v1332_v30 }
0x1192   :  { %v1513_v53 = vpop.eup %1512 }
0x1193   :  { %921 = vrot.lane.b32.xlu0 %v1513_v53, %s1555_s11  ;;  %v1515_v54 = vpop.eup %1514  ;;  %v941_v53 = vadd.f32 %v1866_v63, %v1720_v27 }
0x1194   :  { %v912_v55 = vadd.f32 1.0, %v1515_v54 }
0x1196   :  { %1516 = vrcp.f32 %v912_v55 }
0x11a0   :  { %v1517_v57 = vpop.eup %1516 }
0x11a1   :  { %v919_v41 = vmul.f32 %v1517_v57, %v850_v4  ;;  %v1916_v4 = vld [vmem:[%s2052_s2 + $0x1] ss:$0 sm:$0xff] }
0x1205   :  { %v922_v40 = vpop.permute.xlu0 %921 }
0x1206   :  { %v924_v33 = vmul.f32 %v1517_v57, %v922_v40 }
0x1208   :  { %926 = vrot.lane.b32.xlu1 %v924_v33, %s1555_s11  ;;  %v1524_v33 = vld [vmem:[%s2050_s0 + $0x30] sm:$0xff] }
0x1209   :  { %v942_v26 = vadd.f32 %v1524_v33, %v1878_v49 }
0x127a   :  { %v927_v34 = vpop.permute.xlu1 %926 }
0x127b   :  { %v929_v58 = vadd.f32 %v927_v34, %v919_v41  ;;  %v1525_v41 = vld [vmem:[%s2050_s0 + $0x38] sm:$0xff] }
0x127d   :  { %1518 = vtanh.f32 %v929_v58 }
0x127e   :  { %1520 = vpow2.f32 %v1333_v62 }
0x1287   :  { %v1519_v61 = vpop.eup %1518 }
0x1288   :  { %932 = vrot.lane.b32.xlu0 %v1519_v61, %s1555_s11  ;;  %v1521_v60 = vpop.eup %1520 }
0x1289   :  { %v913_v3 = vadd.f32 1.0, %v1521_v60 }
0x128b   :  { %1522 = vrcp.f32 %v913_v3 }
0x128c   :  { %954 = vrot.lane.b32.xlu0 %v1878_v49, %s1556_s26 }
0x1290   :  { %958 = vrot.lane.b32.xlu0 %v1846_v15, %s1556_s26 }
0x1295   :  { %v1523_v11 = vpop.eup %1522 }
0x12fa   :  { %v933_v52 = vpop.permute.xlu0 %932 }
0x12fb   :  { %v1894_v13 = vmul.f32 %v1523_v11, %v933_v52 }
0x12fd   :  { %952 = vrot.lane.b32.xlu1 %v1894_v13, %s1556_s26  ;;  %v943_v27 = vadd.f32 %v1525_v41, %v1894_v13 }
0x12fe   :  { %v955_v17 = vpop.permute.xlu0 %954 }
0x12ff   :  { %v977_v28 = vadd.f32 %v955_v17, %v937_v1 }
0x1301   :  { %956 = vrot.lane.b32.xlu1 %v1866_v63, %s1556_s26 }
0x1302   :  { %v959_v23 = vpop.permute.xlu0 %958 }
0x1303   :  { %v979_v32 = vadd.f32 %v959_v23, %v939_v37 }
0x1305   :  { %960 = vrot.lane.b32.xlu1 %v1826_v56, %s1556_s26 }
0x136f   :  { %v953_v19 = vpop.permute.xlu1 %952 }
0x1370   :  { %v976_v20 = vadd.f32 %v953_v19, %v936_v21 }
0x1372   :  { %v985_v42 = vpack.c.bf16 %v977_v28, %v976_v20 }
0x1373   :  { %v957_v43 = vpop.permute.xlu1 %956 }
0x1374   :  { %v978_v44 = vadd.f32 %v957_v43, %v938_v31  ;;  %1350 = vmatprep.mubr.msk.bf16.mxu0 %vm71_vm1, %v985_v42 }
0x1376   :  { %v986_v25 = vpack.c.bf16 %v979_v32, %v978_v44 }
0x1377   :  { %v961_v14 = vpop.permute.xlu1 %960 }
0x1378   :  { %1351 = vmatmul.mubr.msk.bf16.vlgmr.msra.gmra.mrb[28].mxu0 %vm71_vm1, %v986_v25  ;;  %v980_v54 = vadd.f32 %v961_v14, %v940_v36 }
0x144b   :  { %v1352_v39 = vpop.f32.mrb[28].mxu0 }
0x144c   :  { %v1056_v56 = vadd.f32 %v1352_v39, %v1916_v4  ;;  %v1047_v38 = vpop.f32.mrb[29].mxu0 }
0x144d   :  { %v1048_v46 = vadd.f32 %v1047_v38, %v1916_v4  ;;  %v1353_v2 = vpop.f32.mrb[30].mxu0 }
0x144e   :  { %1080 = vst [vmem:[%s2053_s3 + $0x10] sm:$0xff] %v1056_v56  ;;  %v1927_v6 = vadd.f32 %v1353_v2, %v1916_v4  ;;  %v1050_v47 = vpop.f32.mrb[31].mxu0 }
0x144f   :  { %1078 = vst [vmem:[%s2053_s3] sm:$0xff] %v1048_v46  ;;  %v1089_v48 = vadd.f32 %v1086_v45, %v1048_v46  ;;  %v1051_v8 = vadd.f32 %v1050_v47, %v1916_v4 }
0x1450   :  { %1081 = vst [vmem:[%s2053_s3 + $0x18] sm:$0xff] %v1927_v6 }
0x1451   :  { %1079 = vst [vmem:[%s2053_s3 + $0x8] sm:$0xff] %v1051_v8  ;;  %1101 = vperm.xlu0 %1392, %v1089_v48   ;;  %1092 = vperm.xlu1 %1391, %v1089_v48  }
0x1455   :  { %964 = vrot.lane.b32.xlu0 %v1769_v22, %s1556_s26  ;;  %962 = vrot.lane.b32.xlu1 %v1805_v7, %s1556_s26  ;;  %v1953_v22 = vrot.slane %v1088_v12, %v1106_v50 }
0x1456   :  { %1393 = vset.pattern.permute.xlu0 %v1553_v0  ;;  %1394 = vset.pattern.permute.xlu1 %v1557_v24 }
0x1459   :  { %966 = vrot.lane.b32.xlu1 %v1696_v9, %s1556_s26  ;;  %s1558_s26 = smov 1  }
0x14d0   :  { %v1102_v7 = vpop.permute.xlu0 %1101  ;;  %v1093_v18 = vpop.permute.xlu1 %1092 }
0x14d1   :  { %v1958_v51 = vadd.f32 %v1953_v22, %v1102_v7  ;;  %v1961_v9 = vadd.f32 %v1955_v16, %v1093_v18 }
0x14d3   :  { %vm1109_vm2 = vcmp.gt.f32.partialorder %v1958_v51, %v1961_v9  ;;  %v1111_v29 = vmax.f32 %v1961_v9, %v1958_v51 }
0x14d4   :  { %v963_v30 = vpop.permute.xlu1 %962  ;;  %v965_v40 = vpop.permute.xlu0 %964  ;;  %v1110_v33 = vsel %vm1109_vm2, 1, %v1553_v0 }
0x14d5   :  { %v981_v55 = vadd.f32 %v963_v30, %v941_v53  ;;  %v1112_v57 = vadd.f32 %v1111_v29, %v1051_v8  ;;  %v982_v34 = vadd.f32 %v965_v40, %v942_v26 }
0x14d7   :  { %v987_v15 = vpack.c.bf16 %v981_v55, %v980_v54  ;;  %1120 = vperm.xlu1 %1394, %v1112_v57   ;;  %1115 = vperm.xlu0 %1393, %v1112_v57   ;;  %v1087_v54 = vld [vmem:[%s2052_s2 + $0x3] ss:$0 sm:$0xff] }
0x14d8   :  { %v967_v63 = vpop.permute.xlu1 %966 }
0x14d9   :  { %v983_v58 = vadd.f32 %v967_v63, %v943_v27  ;;  %1354 = vmatprep.mubr.msk.bf16.mxu1 %vm71_vm1, %v987_v15 }
0x14db   :  { %v988_v59 = vpack.c.bf16 %v983_v58, %v982_v34  ;;  %1395 = vset.pattern.permute.xlu1 %v1553_v0  ;;  %1396 = vset.pattern.permute.xlu0 %v1557_v24 }
0x14dd   :  { %1355 = vmatmul.mubr.msk.bf16.vlgmr.msra.gmra.mrb[20].mxu1 %vm71_vm1, %v988_v59 }
0x1556   :  { %v1116_v49 = vpop.permute.xlu0 %1115  ;;  %v1121_v61 = vpop.permute.xlu1 %1120 }
0x1557   :  { %v1984_v62 = vadd.f32 %v1116_v49, %v1955_v16  ;;  %v1987_v60 = vadd.f32 %v1121_v61, %v1953_v22 }
0x1559   :  { %vm1124_vm3 = vcmp.gt.f32.partialorder %v1987_v60, %v1984_v62  ;;  %v1126_v3 = vmax.f32 %v1984_v62, %v1987_v60 }
0x155a   :  { %v1125_v26 = vsel %vm1124_vm3, 1, %v1553_v0 }
0x155b   :  { %v1127_v5 = vadd.f32 %v1126_v3, %v1056_v56 }
0x155d   :  { %1135 = vperm.xlu0 %1396, %v1127_v5   ;;  %1130 = vperm.xlu1 %1395, %v1127_v5  }
0x1561   :  { %1398 = vset.pattern.permute.xlu0 %v1553_v0 }
0x15b0   :  { %v1356_v11 = vpop.f32.mrb[20].mxu1 }
0x15b1   :  { %v1072_v52 = vadd.f32 %v1356_v11, %v1916_v4  ;;  %v1063_v13 = vpop.f32.mrb[21].mxu1  ;;  %v1211_v11 = vand.u32 127, %v106_v35 }
0x15b2   :  { %v1064_v17 = vadd.f32 %v1063_v13, %v1916_v4  ;;  %v1357_v1 = vpop.f32.mrb[22].mxu1 }
0x15b3   :  { %1084 = vst [vmem:[%s2053_s3 + $0x30] sm:$0xff] %v1072_v52  ;;  %v1075_v21 = vadd.f32 %v1357_v1, %v1916_v4  ;;  %v1066_v19 = vpop.f32.mrb[23].mxu1  ;;  %vm1212_vm0 = vcmp.eq.s32.totalorder %v1211_v11, 7  ;;  %vm1221_vm1 = vcmp.eq.s32.totalorder %v1211_v11, 6  ;;  %vm1230_vm2 = vcmp.eq.s32.totalorder %v1211_v11, 5 }
0x15b4   :  { %1082 = vst [vmem:[%s2053_s3 + $0x20] sm:$0xff] %v1064_v17  ;;  %v1067_v28 = vadd.f32 %v1066_v19, %v1916_v4  ;;  %vm1239_vm3 = vcmp.eq.s32.totalorder %v1211_v11, 4 }
0x15b5   :  { %1085 = vst [vmem:[%s2053_s3 + $0x38] sm:$0xff] %v1075_v21 }
0x15b6   :  { %1083 = vst [vmem:[%s2053_s3 + $0x28] sm:$0xff] %v1067_v28 }
0x15dc   :  { %v1136_v20 = vpop.permute.xlu0 %1135  ;;  %v1131_v23 = vpop.permute.xlu1 %1130 }
0x15dd   :  { %v1138_v37 = vadd.f32 %v1136_v20, %v1953_v22  ;;  %v1133_v42 = vadd.f32 %v1131_v23, %v1955_v16 }
0x15df   :  { %vm1139_vm4 = vcmp.gt.f32.partialorder %v1138_v37, %v1133_v42  ;;  %v1141_v31 = vmax.f32 %v1133_v42, %v1138_v37 }
0x15e1   :  { %v1142_v43 = vadd.f32 %v1141_v31, %v1927_v6 }
0x15e3   :  { %1145 = vperm.xlu1 %1395, %v1142_v43  }
0x15e7   :  { %1397 = vset.pattern.permute.xlu1 %v1557_v24 }
0x15e8   :  { %1150 = vperm.xlu1 %1397, %v1142_v43  }
0x1662   :  { %v1146_v32 = vpop.permute.xlu1 %1145 }
0x1663   :  { %v1148_v25 = vadd.f32 %v1146_v32, %v1955_v16 }
0x1667   :  { %v1151_v44 = vpop.permute.xlu1 %1150 }
0x1668   :  { %v1153_v4 = vadd.f32 %v1151_v44, %v1953_v22 }
0x166a   :  { %vm1154_vm5 = vcmp.gt.f32.partialorder %v1153_v4, %v1148_v25  ;;  %v1156_v39 = vmax.f32 %v1148_v25, %v1153_v4 }
0x166b   :  { %v1155_v40 = vsel %vm1154_vm5, 1, %v1553_v0  ;;  %vm1257_vm5 = vcmp.eq.s32.totalorder %v1211_v11, 2 }
0x166c   :  { %v1157_v56 = vadd.f32 %v1156_v39, %v1064_v17 }
0x166e   :  { %1165 = vperm.xlu1 %1397, %v1157_v56   ;;  %1160 = vperm.xlu0 %1398, %v1157_v56  }
0x1672   :  { %1399 = vset.pattern.permute.xlu1 %v1553_v0  ;;  %1400 = vset.pattern.permute.xlu0 %v1557_v24 }
0x16ed   :  { %v1166_v38 = vpop.permute.xlu1 %1165  ;;  %v1161_v45 = vpop.permute.xlu0 %1160 }
0x16ee   :  { %v1168_v46 = vadd.f32 %v1166_v38, %v1953_v22  ;;  %v1163_v2 = vadd.f32 %v1161_v45, %v1955_v16 }
0x16f0   :  { %vm1169_vm6 = vcmp.gt.f32.partialorder %v1168_v46, %v1163_v2  ;;  %v1171_v6 = vmax.f32 %v1163_v2, %v1168_v46 }
0x16f2   :  { %v1172_v47 = vadd.f32 %v1171_v6, %v1067_v28 }
0x16f4   :  { %1180 = vperm.xlu0 %1400, %v1172_v47   ;;  %1175 = vperm.xlu1 %1399, %v1172_v47  }
0x1773   :  { %v1181_v48 = vpop.permute.xlu0 %1180  ;;  %v1176_v8 = vpop.permute.xlu1 %1175 }
0x1774   :  { %v1183_v50 = vadd.f32 %v1181_v48, %v1953_v22  ;;  %v1178_v10 = vadd.f32 %v1176_v8, %v1955_v16 }
0x1776   :  { %vm1184_vm7 = vcmp.gt.f32.partialorder %v1183_v50, %v1178_v10  ;;  %v1186_v12 = vmax.f32 %v1178_v10, %v1183_v50 }
0x1778   :  { %v1187_v14 = vadd.f32 %v1186_v12, %v1072_v52 }
0x177a   :  { %1190 = vperm.xlu1 %1399, %v1187_v14  }
0x177e   :  { %1401 = vset.pattern.permute.xlu1 %v1557_v24  ;;  %v1170_v24 = vsel %vm1169_vm6, 1, %v1553_v0  ;;  %vm1266_vm6 = vcmp.eq.s32.totalorder %v1211_v11, 1 }
0x177f   :  { %1195 = vperm.xlu1 %1401, %v1187_v14  }
0x17f9   :  { %v1191_v7 = vpop.permute.xlu1 %1190 }
0x17fa   :  { %v1193_v36 = vadd.f32 %v1191_v7, %v1955_v16  ;;  %v1140_v16 = vsel %vm1139_vm4, 1, %v1553_v0  ;;  %vm1248_vm4 = vcmp.eq.s32.totalorder %v1211_v11, 3 }
0x17fe   :  { %v1196_v18 = vpop.permute.xlu1 %1195 }
0x17ff   :  { %v1198_v29 = vadd.f32 %v1196_v18, %v1953_v22  ;;  %v1185_v22 = vsel %vm1184_vm7, 1, %v1553_v0  ;;  %vm1275_vm7 = vcmp.eq.s32.totalorder %v1211_v11, 0 }
0x1801   :  { %vm1199_vm8 = vcmp.gt.f32.partialorder %v1198_v29, %v1193_v36  ;;  %v1201_v53 = vmax.f32 %v1193_v36, %v1198_v29 }
0x1802   :  { %v1200_v30 = vsel %vm1199_vm8, 1, %v1553_v0 }
0x1803   :  { %v1202_v55 = vadd.f32 %v1201_v53, %v1075_v21  ;;  %1218 = vrot.lane.b32.xlu1 %v1200_v30, %s1558_s26 }
0x1805   :  { %v1203_v57 = vadd.f32 %v1202_v55, %v1087_v54 }
0x1807   :  { %1205 = vrot.lane.b32.xlu0 %v1203_v57, %s1558_s26  ;;  %1236 = vrot.lane.b32.xlu1 %v1170_v24, %s1558_s26 }
0x180b   :  { %1227 = vrot.lane.b32.xlu0 %v1185_v22, %s1558_s26  ;;  %1254 = vrot.lane.b32.xlu1 %v1140_v16, %s1558_s26 }
0x180f   :  { %1245 = vrot.lane.b32.xlu0 %v1155_v40, %s1558_s26  ;;  %1272 = vrot.lane.b32.xlu1 %v1110_v33, %s1558_s26 }
0x1813   :  { %1263 = vrot.lane.b32.xlu0 %v1125_v26, %s1558_s26 }
0x1875   :  { %v1219_v15 = vpop.permute.xlu1 %1218 }
0x1879   :  { %v1206_v41 = vpop.permute.xlu0 %1205  ;;  %v1237_v63 = vpop.permute.xlu1 %1236 }
0x187a   :  { %vm1208_vm9 = vcmp.gt.f32.partialorder %v1203_v57, %v1206_v41 }
0x187b   :  { %v1209_v27 = vsel %vm1208_vm9, 1, %v1553_v0  ;;  %v1220_v34 = vsel %vm1208_vm9, %v1200_v30, %v1219_v15 }
0x187c   :  { %1214 = vperm.xlu0 %1400, %v1209_v27   ;;  %vm1226_vm10 = vcmp.eq.s32.totalorder %v1220_v34, 1  ;;  %1223 = vperm.xlu1 %1401, %v1220_v34  }
0x187d   :  { %v1228_v51 = vpop.permute.xlu0 %1227  ;;  %v1255_v59 = vpop.permute.xlu1 %1254 }
0x187e   :  { %v1229_v9 = vsel %vm1226_vm10, %v1185_v22, %v1228_v51 }
0x187f   :  { %vm1235_vm11 = vcmp.eq.s32.totalorder %v1229_v9, 1 }
0x1880   :  { %1232 = vperm.xlu0 %1400, %v1229_v9   ;;  %v1238_v58 = vsel %vm1235_vm11, %v1170_v24, %v1237_v63 }
0x1881   :  { %v1246_v49 = vpop.permute.xlu0 %1245  ;;  %1241 = vperm.xlu1 %1401, %v1238_v58   ;;  %vm1244_vm12 = vcmp.eq.s32.totalorder %v1238_v58, 1  ;;  %v1273_v3 = vpop.permute.xlu1 %1272 }
0x1882   :  { %v1247_v61 = vsel %vm1244_vm12, %v1155_v40, %v1246_v49 }
0x1883   :  { %vm1253_vm13 = vcmp.eq.s32.totalorder %v1247_v61, 1 }
0x1884   :  { %1250 = vperm.xlu0 %1400, %v1247_v61   ;;  %v1256_v62 = vsel %vm1253_vm13, %v1140_v16, %v1255_v59 }
0x1885   :  { %v1264_v60 = vpop.permute.xlu0 %1263  ;;  %1259 = vperm.xlu1 %1401, %v1256_v62   ;;  %vm1262_vm14 = vcmp.eq.s32.totalorder %v1256_v62, 1 }
0x1886   :  { %v1265_v0 = vsel %vm1262_vm14, %v1125_v26, %v1264_v60 }
0x1887   :  { %vm1271_vm15 = vcmp.eq.s32.totalorder %v1265_v0, 1 }
0x1888   :  { %1268 = vperm.xlu0 %1400, %v1265_v0   ;;  %v1274_v5 = vsel %vm1271_vm15, %v1110_v33, %v1273_v3 }
0x1889   :  { %1277 = vperm.xlu1 %1401, %v1274_v5  }
0x18fb   :  { %v1215_v52 = vpop.permute.xlu0 %1214  ;;  %v1224_v13 = vpop.permute.xlu1 %1223 }
0x18fc   :  { %v1216_v17 = vsel %vm1212_vm0, %v1215_v52, 0 }
0x18fd   :  { %v1225_v1 = vsel %vm1221_vm1, %v1224_v13, %v1216_v17 }
0x18ff   :  { %v1233_v21 = vpop.permute.xlu0 %1232 }
0x1900   :  { %v1234_v19 = vsel %vm1230_vm2, %v1233_v21, %v1225_v1  ;;  %v1242_v28 = vpop.permute.xlu1 %1241 }
0x1901   :  { %v1243_v20 = vsel %vm1239_vm3, %v1242_v28, %v1234_v19 }
0x1903   :  { %v1251_v23 = vpop.permute.xlu0 %1250 }
0x1904   :  { %v1252_v37 = vsel %vm1248_vm4, %v1251_v23, %v1243_v20  ;;  %v1260_v42 = vpop.permute.xlu1 %1259 }
0x1905   :  { %v1261_v35 = vsel %vm1257_vm5, %v1260_v42, %v1252_v37 }
0x1907   :  { %v1269_v31 = vpop.permute.xlu0 %1268 }
0x1908   :  { %v1270_v43 = vsel %vm1266_vm6, %v1269_v31, %v1261_v35  ;;  %v1278_v32 = vpop.permute.xlu1 %1277 }
0x1909   :  { %v1279_v44 = vsel %vm1275_vm7, %v1278_v32, %v1270_v43 }
0x190a   :  { %1280 = vst [vmem:[%s2054_s4] sm:$0xff] %v1279_v44 }
0x190b   :  { %1289 = vsyncpa [#allocation4], 1 }

</bundles_post_ra>
